<compile_context>
chip_gen: v5e
topology: v5e:2x2
jax: 0.10.0
libtpu: 0.0.40
codegen_flags: <defaults>
</compile_context>

<pallas_src>
import functools

import jax
import jax.numpy as jnp
import numpy as np
from jax import lax
from jax.experimental import pallas as pl
from jax.experimental.pallas import tpu as pltpu

GP = 128      # lanes per fused gate group (one vreg lane group per gate)
NGATES = 4    # i, f, g, o (PyTorch gate order)


def _bilstm_fc_kernel(x_ref, w_ih_ref, b_ref, w_hh_ref, fc_w_ref, fc_b_ref,
                      out_ref, *, seq_len, batch_pad):
    T, B = seq_len, batch_pad
    SW = GP                          # fused state width: [h_f | h_b | pad]

    # ---- Hoisted input projection: one GEMM for all timesteps, both
    # directions, bias folded in.  x_ref is (T*B, 2*D); the second half of the
    # feature axis already holds the time-reversed sequence for the backward
    # direction, so xproj rows are already in loop-step order.
    xproj = (jnp.dot(x_ref[...], w_ih_ref[...],
                     preferred_element_type=jnp.float32)
             + b_ref[...])           # (T*B, 4*GP)

    # Hoist the recurrent weight load out of the unrolled loop: one load
    # stream reused by every step (instead of T duplicated full-tensor loads).
    w_hh = w_hh_ref[...]             # (SW, 4*GP)

    h = jnp.zeros((B, SW), jnp.float32)
    c = jnp.zeros((B, SW), jnp.float32)

    # ---- Fused bidirectional recurrence, fully unrolled (T is static).
    # Gate column layout: 4 groups of GP lanes, each group = [fwd 0:H | bwd
    # H:2H | pad]; this matches the carried-state lane layout exactly, so all
    # elementwise ops line up lane-for-lane with no relayouts.
    for t in range(T):
        gates = (jnp.dot(h, w_hh, preferred_element_type=jnp.float32)
                 + xproj[t * B:(t + 1) * B, :])          # (B, 4*GP)
        i_g = jax.nn.sigmoid(gates[:, 0 * GP:1 * GP])
        f_g = jax.nn.sigmoid(gates[:, 1 * GP:2 * GP])
        g_g = jnp.tanh(gates[:, 2 * GP:3 * GP])
        o_g = jax.nn.sigmoid(gates[:, 3 * GP:4 * GP])
        c = f_g * c + i_g * g_g
        h = o_g * jnp.tanh(c)

    # ---- fc on [h_f | h_b | pad] + leaky_relu (negative_slope = 0.01).
    # fc_w rows for padded state lanes are zero and its output columns are
    # zero-padded to a full 128-lane group, so the store is an unmasked vst.
    out = (jnp.dot(h, fc_w_ref[...], preferred_element_type=jnp.float32)
           + fc_b_ref[...])
    out_ref[...] = jnp.where(out >= 0.0, out, 0.01 * out)


def lstm_baseline_forward(x, packed, *, out_feat_dim):
    B, T, D = x.shape
    B_pad = max(8, pl.cdiv(B, 8) * 8)          # fill the 8-sublane tile
    x_tm = jnp.transpose(x, (1, 0, 2)).astype(jnp.float32)        # (T, B, D)
    # Forward direction consumes x[t], backward consumes x[T-1-t]; concatenate
    # on the feature axis so the whole input projection is ONE GEMM.
    x_fused = jnp.concatenate([x_tm, x_tm[::-1]], axis=-1)        # (T, B, 2D)
    x_fused = jnp.pad(x_fused, ((0, 0), (0, B_pad - B), (0, 0)))  # (T, Bp, 2D)
    x_fused = x_fused.reshape(T * B_pad, 2 * D)

    f_pad = packed["fc_w"].shape[1]
    kernel = functools.partial(_bilstm_fc_kernel, seq_len=T, batch_pad=B_pad)
    vmem = pl.BlockSpec(memory_space=pltpu.MemorySpace.VMEM)
    args = (x_fused, packed["w_ih"], packed["b"], packed["w_hh"],
            packed["fc_w"], packed["fc_b"])
    out_pad = pl.pallas_call(
        kernel,
        out_shape=jax.ShapeDtypeStruct((B_pad, f_pad), jnp.float32),
        in_specs=[vmem] * len(args),
        out_specs=vmem,
    )(*args)
    return out_pad[:B, :out_feat_dim]


def init_params(key, *, input_size, hidden_size, out_feat_dim):
    """Raw (unpadded) params, mimicking torch's uniform(-1/sqrt(H), 1/sqrt(H))."""
    H, D, F = hidden_size, input_size, out_feat_dim
    k_lstm = 1.0 / np.sqrt(H)
    k_fc = 1.0 / np.sqrt(2 * H)
    keys = jax.random.split(key, 10)

    def u(k, shape, bound):
        return jax.random.uniform(k, shape, jnp.float32, -bound, bound)

    return {
        "w_ih_f": u(keys[0], (D, 4 * H), k_lstm),
        "w_hh_f": u(keys[1], (H, 4 * H), k_lstm),
        # torch adds b_ih + b_hh; fold both into one (1, 4H) bias
        "b_f": u(keys[2], (1, 4 * H), k_lstm) + u(keys[3], (1, 4 * H), k_lstm),
        "w_ih_b": u(keys[4], (D, 4 * H), k_lstm),
        "w_hh_b": u(keys[5], (H, 4 * H), k_lstm),
        "b_b": u(keys[6], (1, 4 * H), k_lstm) + u(keys[7], (1, 4 * H), k_lstm),
        "fc_w": u(keys[8], (2 * H, F), k_fc),
        "fc_b": u(keys[9], (1, F), k_fc),
    }


def pack_params(params, *, input_size, hidden_size, out_feat_dim):
    """Pack raw params into the fused, lane-aligned layout the kernel uses.

    Gate column groups (GP=128 lanes each): 4 groups [i, f, g, o]; within a
    group, lanes 0:H = forward direction, lanes H:2H = backward, rest zero.
    Carried-state lanes: [h_f 0:H | h_b H:2H | pad] -> block-diagonal w_hh
    with zero rows 2H:GP, so padded lanes stay exactly inert.
    """
    H, D, F = hidden_size, input_size, out_feat_dim
    assert 2 * H <= GP, "both directions of a gate must fit one lane group"
    G = NGATES * GP                  # 512 fused gate columns
    SW = GP                          # 128 carried-state lanes
    F_pad = max(GP, pl.cdiv(F, GP) * GP)

    w_ih_f = np.asarray(params["w_ih_f"]); w_ih_b = np.asarray(params["w_ih_b"])
    w_hh_f = np.asarray(params["w_hh_f"]); w_hh_b = np.asarray(params["w_hh_b"])
    b_f = np.asarray(params["b_f"]); b_b = np.asarray(params["b_b"])

    def col(gate, direction):
        return gate * GP + direction * H

    w_ih = np.zeros((2 * D, G), np.float32)
    w_hh = np.zeros((SW, G), np.float32)
    b = np.zeros((1, G), np.float32)
    for g in range(NGATES):
        w_ih[0:D, col(g, 0):col(g, 0) + H] = w_ih_f[:, g * H:(g + 1) * H]
        w_ih[D:2 * D, col(g, 1):col(g, 1) + H] = w_ih_b[:, g * H:(g + 1) * H]
        w_hh[0:H, col(g, 0):col(g, 0) + H] = w_hh_f[:, g * H:(g + 1) * H]
        w_hh[H:2 * H, col(g, 1):col(g, 1) + H] = w_hh_b[:, g * H:(g + 1) * H]
        b[:, col(g, 0):col(g, 0) + H] = b_f[:, g * H:(g + 1) * H]
        b[:, col(g, 1):col(g, 1) + H] = b_b[:, g * H:(g + 1) * H]

    fc_w_raw = np.asarray(params["fc_w"])
    fc_w = np.zeros((SW, F_pad), np.float32)
    fc_w[0:H, 0:F] = fc_w_raw[0:H, :]          # forward half of concat([h_f, h_b])
    fc_w[H:2 * H, 0:F] = fc_w_raw[H:2 * H, :]  # backward half
    fc_b = np.zeros((1, F_pad), np.float32)
    fc_b[:, 0:F] = np.asarray(params["fc_b"])

    return {
        "w_ih": jnp.asarray(w_ih),
        "w_hh": jnp.asarray(w_hh),
        "b": jnp.asarray(b),
        "fc_w": jnp.asarray(fc_w),
        "fc_b": jnp.asarray(fc_b),
    }


def reference_forward(x, params, *, hidden_size):
    """Pure-JAX reference matching torch.nn.LSTM(bidirectional) + Linear + leaky_relu."""
    H = hidden_size

    def run_dir(xs, w_ih, w_hh, b):
        def step(carry, x_t):
            h, c = carry
            gates = x_t @ w_ih + h @ w_hh + b
            i = jax.nn.sigmoid(gates[:, 0 * H:1 * H])
            f = jax.nn.sigmoid(gates[:, 1 * H:2 * H])
            g = jnp.tanh(gates[:, 2 * H:3 * H])
            o = jax.nn.sigmoid(gates[:, 3 * H:4 * H])
            c = f * c + i * g
            h = o * jnp.tanh(c)
            return (h, c), None

        B = xs.shape[1]
        init = (jnp.zeros((B, H), jnp.float32), jnp.zeros((B, H), jnp.float32))
        (h, _), _ = lax.scan(step, init, xs)
        return h

    x_tm = jnp.transpose(x, (1, 0, 2))
    h_f = run_dir(x_tm, params["w_ih_f"], params["w_hh_f"], params["b_f"])
    h_b = run_dir(x_tm[::-1], params["w_ih_b"], params["w_hh_b"], params["b_b"])
    feat = jnp.concatenate([h_f, h_b], axis=-1)   # == h_n.permute(1,0,2).reshape(B,-1)
    out = feat @ params["fc_w"] + params["fc_b"]
    return jnp.where(out >= 0, out, 0.01 * out)


if __name__ == "__main__":
    B, T, D = 2, 8, 16            # x: (B, T, d)
    HIDDEN = 32
    OUT_FEAT = 64

    key = jax.random.PRNGKey(0)
    key_x, key_p = jax.random.split(key)
    x = jax.random.normal(key_x, (B, T, D), jnp.float32)
    params = init_params(key_p, input_size=D, hidden_size=HIDDEN,
                         out_feat_dim=OUT_FEAT)
    packed = pack_params(params, input_size=D, hidden_size=HIDDEN,
                         out_feat_dim=OUT_FEAT)

    out = lstm_baseline_forward(x, packed, out_feat_dim=OUT_FEAT)
    out = jax.block_until_ready(out)

    ref = reference_forward(x, params, hidden_size=HIDDEN)
    np.testing.assert_allclose(np.asarray(out), np.asarray(ref),
                               rtol=1e-5, atol=2e-5)
    print("KERNEL_OK")
</pallas_src>

<mosaic_0001>
module attributes {stable_mosaic.version = 11 : i64} {
  func.func @_bilstm_fc_kernel(%arg0: memref<64x32xf32, #tpu.memory_space<vmem>>, %arg1: memref<32x512xf32, #tpu.memory_space<vmem>>, %arg2: memref<1x512xf32, #tpu.memory_space<vmem>>, %arg3: memref<128x512xf32, #tpu.memory_space<vmem>>, %arg4: memref<128x128xf32, #tpu.memory_space<vmem>>, %arg5: memref<1x128xf32, #tpu.memory_space<vmem>>, %arg6: memref<8x128xf32, #tpu.memory_space<vmem>>) attributes {dimension_semantics = [], scalar_prefetch = 0 : i64, scratch_operands = 0 : i64, tpu.core_type = #tpu.core_type<tc>} {
    %c0 = arith.constant 0 : index
    %c0_0 = arith.constant 0 : index
    %0 = vector.load %arg0[%c0, %c0_0] : memref<64x32xf32, #tpu.memory_space<vmem>>, vector<64x32xf32>
    %c0_1 = arith.constant 0 : index
    %c0_2 = arith.constant 0 : index
    %1 = vector.load %arg1[%c0_1, %c0_2] : memref<32x512xf32, #tpu.memory_space<vmem>>, vector<32x512xf32>
    %cst = arith.constant dense<0.000000e+00> : vector<64x512xf32>
    %2 = tpu.matmul %0, %1, %cst {dimension_numbers = #tpu.dot_dimension_numbers<[1], [0], [0], [1], [0, 0, 1, 1], [], []>} : vector<64x32xf32>, vector<32x512xf32>, vector<64x512xf32> -> vector<64x512xf32>
    %c0_3 = arith.constant 0 : index
    %c0_4 = arith.constant 0 : index
    %3 = vector.load %arg2[%c0_3, %c0_4] : memref<1x512xf32, #tpu.memory_space<vmem>>, vector<1x512xf32>
    %4 = vector.broadcast %3 : vector<1x512xf32> to vector<64x512xf32>
    %5 = arith.addf %2, %4 : vector<64x512xf32>
    %c0_5 = arith.constant 0 : index
    %c0_6 = arith.constant 0 : index
    %6 = vector.load %arg3[%c0_5, %c0_6] : memref<128x512xf32, #tpu.memory_space<vmem>>, vector<128x512xf32>
    %cst_7 = arith.constant 0.000000e+00 : f32
    %7 = vector.broadcast %cst_7 : f32 to vector<8x128xf32>
    %cst_8 = arith.constant 0.000000e+00 : f32
    %8 = vector.broadcast %cst_8 : f32 to vector<8x128xf32>
    %cst_9 = arith.constant dense<0.000000e+00> : vector<8x512xf32>
    %9 = tpu.matmul %7, %6, %cst_9 {dimension_numbers = #tpu.dot_dimension_numbers<[1], [0], [0], [1], [0, 0, 1, 1], [], []>} : vector<8x128xf32>, vector<128x512xf32>, vector<8x512xf32> -> vector<8x512xf32>
    %10 = vector.extract_strided_slice %5 {offsets = [0, 0], sizes = [8, 512], strides = [1, 1]} : vector<64x512xf32> to vector<8x512xf32>
    %11 = arith.addf %9, %10 : vector<8x512xf32>
    %12 = vector.extract_strided_slice %11 {offsets = [0, 0], sizes = [8, 128], strides = [1, 1]} : vector<8x512xf32> to vector<8x128xf32>
    %13 = arith.negf %12 : vector<8x128xf32>
    %14 = math.exp %13 : vector<8x128xf32>
    %cst_10 = arith.constant 1.000000e+00 : f32
    %15 = vector.broadcast %cst_10 : f32 to vector<8x128xf32>
    %16 = arith.addf %15, %14 : vector<8x128xf32>
    %17 = arith.divf %15, %16 : vector<8x128xf32>
    %18 = vector.extract_strided_slice %11 {offsets = [0, 128], sizes = [8, 128], strides = [1, 1]} : vector<8x512xf32> to vector<8x128xf32>
    %19 = arith.negf %18 : vector<8x128xf32>
    %20 = math.exp %19 : vector<8x128xf32>
    %cst_11 = arith.constant 1.000000e+00 : f32
    %21 = vector.broadcast %cst_11 : f32 to vector<8x128xf32>
    %22 = arith.addf %21, %20 : vector<8x128xf32>
    %23 = arith.divf %21, %22 : vector<8x128xf32>
    %24 = vector.extract_strided_slice %11 {offsets = [0, 256], sizes = [8, 128], strides = [1, 1]} : vector<8x512xf32> to vector<8x128xf32>
    %25 = math.tanh %24 : vector<8x128xf32>
    %26 = vector.extract_strided_slice %11 {offsets = [0, 384], sizes = [8, 128], strides = [1, 1]} : vector<8x512xf32> to vector<8x128xf32>
    %27 = arith.negf %26 : vector<8x128xf32>
    %28 = math.exp %27 : vector<8x128xf32>
    %cst_12 = arith.constant 1.000000e+00 : f32
    %29 = vector.broadcast %cst_12 : f32 to vector<8x128xf32>
    %30 = arith.addf %29, %28 : vector<8x128xf32>
    %31 = arith.divf %29, %30 : vector<8x128xf32>
    %32 = arith.mulf %23, %8 : vector<8x128xf32>
    %33 = arith.mulf %17, %25 : vector<8x128xf32>
    %34 = arith.addf %32, %33 : vector<8x128xf32>
    %35 = math.tanh %34 : vector<8x128xf32>
    %36 = arith.mulf %31, %35 : vector<8x128xf32>
    %cst_13 = arith.constant dense<0.000000e+00> : vector<8x512xf32>
    %37 = tpu.matmul %36, %6, %cst_13 {dimension_numbers = #tpu.dot_dimension_numbers<[1], [0], [0], [1], [0, 0, 1, 1], [], []>} : vector<8x128xf32>, vector<128x512xf32>, vector<8x512xf32> -> vector<8x512xf32>
    %38 = vector.extract_strided_slice %5 {offsets = [8, 0], sizes = [8, 512], strides = [1, 1]} : vector<64x512xf32> to vector<8x512xf32>
    %39 = arith.addf %37, %38 : vector<8x512xf32>
    %40 = vector.extract_strided_slice %39 {offsets = [0, 0], sizes = [8, 128], strides = [1, 1]} : vector<8x512xf32> to vector<8x128xf32>
    %41 = arith.negf %40 : vector<8x128xf32>
    %42 = math.exp %41 : vector<8x128xf32>
    %cst_14 = arith.constant 1.000000e+00 : f32
    %43 = vector.broadcast %cst_14 : f32 to vector<8x128xf32>
    %44 = arith.addf %43, %42 : vector<8x128xf32>
    %45 = arith.divf %43, %44 : vector<8x128xf32>
    %46 = vector.extract_strided_slice %39 {offsets = [0, 128], sizes = [8, 128], strides = [1, 1]} : vector<8x512xf32> to vector<8x128xf32>
    %47 = arith.negf %46 : vector<8x128xf32>
    %48 = math.exp %47 : vector<8x128xf32>
    %cst_15 = arith.constant 1.000000e+00 : f32
    %49 = vector.broadcast %cst_15 : f32 to vector<8x128xf32>
    %50 = arith.addf %49, %48 : vector<8x128xf32>
    %51 = arith.divf %49, %50 : vector<8x128xf32>
    %52 = vector.extract_strided_slice %39 {offsets = [0, 256], sizes = [8, 128], strides = [1, 1]} : vector<8x512xf32> to vector<8x128xf32>
    %53 = math.tanh %52 : vector<8x128xf32>
    %54 = vector.extract_strided_slice %39 {offsets = [0, 384], sizes = [8, 128], strides = [1, 1]} : vector<8x512xf32> to vector<8x128xf32>
    %55 = arith.negf %54 : vector<8x128xf32>
    %56 = math.exp %55 : vector<8x128xf32>
    %cst_16 = arith.constant 1.000000e+00 : f32
    %57 = vector.broadcast %cst_16 : f32 to vector<8x128xf32>
    %58 = arith.addf %57, %56 : vector<8x128xf32>
    %59 = arith.divf %57, %58 : vector<8x128xf32>
    %60 = arith.mulf %51, %34 : vector<8x128xf32>
    %61 = arith.mulf %45, %53 : vector<8x128xf32>
    %62 = arith.addf %60, %61 : vector<8x128xf32>
    %63 = math.tanh %62 : vector<8x128xf32>
    %64 = arith.mulf %59, %63 : vector<8x128xf32>
    %cst_17 = arith.constant dense<0.000000e+00> : vector<8x512xf32>
    %65 = tpu.matmul %64, %6, %cst_17 {dimension_numbers = #tpu.dot_dimension_numbers<[1], [0], [0], [1], [0, 0, 1, 1], [], []>} : vector<8x128xf32>, vector<128x512xf32>, vector<8x512xf32> -> vector<8x512xf32>
    %66 = vector.extract_strided_slice %5 {offsets = [16, 0], sizes = [8, 512], strides = [1, 1]} : vector<64x512xf32> to vector<8x512xf32>
    %67 = arith.addf %65, %66 : vector<8x512xf32>
    %68 = vector.extract_strided_slice %67 {offsets = [0, 0], sizes = [8, 128], strides = [1, 1]} : vector<8x512xf32> to vector<8x128xf32>
    %69 = arith.negf %68 : vector<8x128xf32>
    %70 = math.exp %69 : vector<8x128xf32>
    %cst_18 = arith.constant 1.000000e+00 : f32
    %71 = vector.broadcast %cst_18 : f32 to vector<8x128xf32>
    %72 = arith.addf %71, %70 : vector<8x128xf32>
    %73 = arith.divf %71, %72 : vector<8x128xf32>
    %74 = vector.extract_strided_slice %67 {offsets = [0, 128], sizes = [8, 128], strides = [1, 1]} : vector<8x512xf32> to vector<8x128xf32>
    %75 = arith.negf %74 : vector<8x128xf32>
    %76 = math.exp %75 : vector<8x128xf32>
    %cst_19 = arith.constant 1.000000e+00 : f32
    %77 = vector.broadcast %cst_19 : f32 to vector<8x128xf32>
    %78 = arith.addf %77, %76 : vector<8x128xf32>
    %79 = arith.divf %77, %78 : vector<8x128xf32>
    %80 = vector.extract_strided_slice %67 {offsets = [0, 256], sizes = [8, 128], strides = [1, 1]} : vector<8x512xf32> to vector<8x128xf32>
    %81 = math.tanh %80 : vector<8x128xf32>
    %82 = vector.extract_strided_slice %67 {offsets = [0, 384], sizes = [8, 128], strides = [1, 1]} : vector<8x512xf32> to vector<8x128xf32>
    %83 = arith.negf %82 : vector<8x128xf32>
    %84 = math.exp %83 : vector<8x128xf32>
    %cst_20 = arith.constant 1.000000e+00 : f32
    %85 = vector.broadcast %cst_20 : f32 to vector<8x128xf32>
    %86 = arith.addf %85, %84 : vector<8x128xf32>
    %87 = arith.divf %85, %86 : vector<8x128xf32>
    %88 = arith.mulf %79, %62 : vector<8x128xf32>
    %89 = arith.mulf %73, %81 : vector<8x128xf32>
    %90 = arith.addf %88, %89 : vector<8x128xf32>
    %91 = math.tanh %90 : vector<8x128xf32>
    %92 = arith.mulf %87, %91 : vector<8x128xf32>
    %cst_21 = arith.constant dense<0.000000e+00> : vector<8x512xf32>
    %93 = tpu.matmul %92, %6, %cst_21 {dimension_numbers = #tpu.dot_dimension_numbers<[1], [0], [0], [1], [0, 0, 1, 1], [], []>} : vector<8x128xf32>, vector<128x512xf32>, vector<8x512xf32> -> vector<8x512xf32>
    %94 = vector.extract_strided_slice %5 {offsets = [24, 0], sizes = [8, 512], strides = [1, 1]} : vector<64x512xf32> to vector<8x512xf32>
    %95 = arith.addf %93, %94 : vector<8x512xf32>
    %96 = vector.extract_strided_slice %95 {offsets = [0, 0], sizes = [8, 128], strides = [1, 1]} : vector<8x512xf32> to vector<8x128xf32>
    %97 = arith.negf %96 : vector<8x128xf32>
    %98 = math.exp %97 : vector<8x128xf32>
    %cst_22 = arith.constant 1.000000e+00 : f32
    %99 = vector.broadcast %cst_22 : f32 to vector<8x128xf32>
    %100 = arith.addf %99, %98 : vector<8x128xf32>
    %101 = arith.divf %99, %100 : vector<8x128xf32>
    %102 = vector.extract_strided_slice %95 {offsets = [0, 128], sizes = [8, 128], strides = [1, 1]} : vector<8x512xf32> to vector<8x128xf32>
    %103 = arith.negf %102 : vector<8x128xf32>
    %104 = math.exp %103 : vector<8x128xf32>
    %cst_23 = arith.constant 1.000000e+00 : f32
    %105 = vector.broadcast %cst_23 : f32 to vector<8x128xf32>
    %106 = arith.addf %105, %104 : vector<8x128xf32>
    %107 = arith.divf %105, %106 : vector<8x128xf32>
    %108 = vector.extract_strided_slice %95 {offsets = [0, 256], sizes = [8, 128], strides = [1, 1]} : vector<8x512xf32> to vector<8x128xf32>
    %109 = math.tanh %108 : vector<8x128xf32>
    %110 = vector.extract_strided_slice %95 {offsets = [0, 384], sizes = [8, 128], strides = [1, 1]} : vector<8x512xf32> to vector<8x128xf32>
    %111 = arith.negf %110 : vector<8x128xf32>
    %112 = math.exp %111 : vector<8x128xf32>
    %cst_24 = arith.constant 1.000000e+00 : f32
    %113 = vector.broadcast %cst_24 : f32 to vector<8x128xf32>
    %114 = arith.addf %113, %112 : vector<8x128xf32>
    %115 = arith.divf %113, %114 : vector<8x128xf32>
    %116 = arith.mulf %107, %90 : vector<8x128xf32>
    %117 = arith.mulf %101, %109 : vector<8x128xf32>
    %118 = arith.addf %116, %117 : vector<8x128xf32>
    %119 = math.tanh %118 : vector<8x128xf32>
    %120 = arith.mulf %115, %119 : vector<8x128xf32>
    %cst_25 = arith.constant dense<0.000000e+00> : vector<8x512xf32>
    %121 = tpu.matmul %120, %6, %cst_25 {dimension_numbers = #tpu.dot_dimension_numbers<[1], [0], [0], [1], [0, 0, 1, 1], [], []>} : vector<8x128xf32>, vector<128x512xf32>, vector<8x512xf32> -> vector<8x512xf32>
    %122 = vector.extract_strided_slice %5 {offsets = [32, 0], sizes = [8, 512], strides = [1, 1]} : vector<64x512xf32> to vector<8x512xf32>
    %123 = arith.addf %121, %122 : vector<8x512xf32>
    %124 = vector.extract_strided_slice %123 {offsets = [0, 0], sizes = [8, 128], strides = [1, 1]} : vector<8x512xf32> to vector<8x128xf32>
    %125 = arith.negf %124 : vector<8x128xf32>
    %126 = math.exp %125 : vector<8x128xf32>
    %cst_26 = arith.constant 1.000000e+00 : f32
    %127 = vector.broadcast %cst_26 : f32 to vector<8x128xf32>
    %128 = arith.addf %127, %126 : vector<8x128xf32>
    %129 = arith.divf %127, %128 : vector<8x128xf32>
    %130 = vector.extract_strided_slice %123 {offsets = [0, 128], sizes = [8, 128], strides = [1, 1]} : vector<8x512xf32> to vector<8x128xf32>
    %131 = arith.negf %130 : vector<8x128xf32>
    %132 = math.exp %131 : vector<8x128xf32>
    %cst_27 = arith.constant 1.000000e+00 : f32
    %133 = vector.broadcast %cst_27 : f32 to vector<8x128xf32>
    %134 = arith.addf %133, %132 : vector<8x128xf32>
    %135 = arith.divf %133, %134 : vector<8x128xf32>
    %136 = vector.extract_strided_slice %123 {offsets = [0, 256], sizes = [8, 128], strides = [1, 1]} : vector<8x512xf32> to vector<8x128xf32>
    %137 = math.tanh %136 : vector<8x128xf32>
    %138 = vector.extract_strided_slice %123 {offsets = [0, 384], sizes = [8, 128], strides = [1, 1]} : vector<8x512xf32> to vector<8x128xf32>
    %139 = arith.negf %138 : vector<8x128xf32>
    %140 = math.exp %139 : vector<8x128xf32>
    %cst_28 = arith.constant 1.000000e+00 : f32
    %141 = vector.broadcast %cst_28 : f32 to vector<8x128xf32>
    %142 = arith.addf %141, %140 : vector<8x128xf32>
    %143 = arith.divf %141, %142 : vector<8x128xf32>
    %144 = arith.mulf %135, %118 : vector<8x128xf32>
    %145 = arith.mulf %129, %137 : vector<8x128xf32>
    %146 = arith.addf %144, %145 : vector<8x128xf32>
    %147 = math.tanh %146 : vector<8x128xf32>
    %148 = arith.mulf %143, %147 : vector<8x128xf32>
    %cst_29 = arith.constant dense<0.000000e+00> : vector<8x512xf32>
    %149 = tpu.matmul %148, %6, %cst_29 {dimension_numbers = #tpu.dot_dimension_numbers<[1], [0], [0], [1], [0, 0, 1, 1], [], []>} : vector<8x128xf32>, vector<128x512xf32>, vector<8x512xf32> -> vector<8x512xf32>
    %150 = vector.extract_strided_slice %5 {offsets = [40, 0], sizes = [8, 512], strides = [1, 1]} : vector<64x512xf32> to vector<8x512xf32>
    %151 = arith.addf %149, %150 : vector<8x512xf32>
    %152 = vector.extract_strided_slice %151 {offsets = [0, 0], sizes = [8, 128], strides = [1, 1]} : vector<8x512xf32> to vector<8x128xf32>
    %153 = arith.negf %152 : vector<8x128xf32>
    %154 = math.exp %153 : vector<8x128xf32>
    %cst_30 = arith.constant 1.000000e+00 : f32
    %155 = vector.broadcast %cst_30 : f32 to vector<8x128xf32>
    %156 = arith.addf %155, %154 : vector<8x128xf32>
    %157 = arith.divf %155, %156 : vector<8x128xf32>
    %158 = vector.extract_strided_slice %151 {offsets = [0, 128], sizes = [8, 128], strides = [1, 1]} : vector<8x512xf32> to vector<8x128xf32>
    %159 = arith.negf %158 : vector<8x128xf32>
    %160 = math.exp %159 : vector<8x128xf32>
    %cst_31 = arith.constant 1.000000e+00 : f32
    %161 = vector.broadcast %cst_31 : f32 to vector<8x128xf32>
    %162 = arith.addf %161, %160 : vector<8x128xf32>
    %163 = arith.divf %161, %162 : vector<8x128xf32>
    %164 = vector.extract_strided_slice %151 {offsets = [0, 256], sizes = [8, 128], strides = [1, 1]} : vector<8x512xf32> to vector<8x128xf32>
    %165 = math.tanh %164 : vector<8x128xf32>
    %166 = vector.extract_strided_slice %151 {offsets = [0, 384], sizes = [8, 128], strides = [1, 1]} : vector<8x512xf32> to vector<8x128xf32>
    %167 = arith.negf %166 : vector<8x128xf32>
    %168 = math.exp %167 : vector<8x128xf32>
    %cst_32 = arith.constant 1.000000e+00 : f32
    %169 = vector.broadcast %cst_32 : f32 to vector<8x128xf32>
    %170 = arith.addf %169, %168 : vector<8x128xf32>
    %171 = arith.divf %169, %170 : vector<8x128xf32>
    %172 = arith.mulf %163, %146 : vector<8x128xf32>
    %173 = arith.mulf %157, %165 : vector<8x128xf32>
    %174 = arith.addf %172, %173 : vector<8x128xf32>
    %175 = math.tanh %174 : vector<8x128xf32>
    %176 = arith.mulf %171, %175 : vector<8x128xf32>
    %cst_33 = arith.constant dense<0.000000e+00> : vector<8x512xf32>
    %177 = tpu.matmul %176, %6, %cst_33 {dimension_numbers = #tpu.dot_dimension_numbers<[1], [0], [0], [1], [0, 0, 1, 1], [], []>} : vector<8x128xf32>, vector<128x512xf32>, vector<8x512xf32> -> vector<8x512xf32>
    %178 = vector.extract_strided_slice %5 {offsets = [48, 0], sizes = [8, 512], strides = [1, 1]} : vector<64x512xf32> to vector<8x512xf32>
    %179 = arith.addf %177, %178 : vector<8x512xf32>
    %180 = vector.extract_strided_slice %179 {offsets = [0, 0], sizes = [8, 128], strides = [1, 1]} : vector<8x512xf32> to vector<8x128xf32>
    %181 = arith.negf %180 : vector<8x128xf32>
    %182 = math.exp %181 : vector<8x128xf32>
    %cst_34 = arith.constant 1.000000e+00 : f32
    %183 = vector.broadcast %cst_34 : f32 to vector<8x128xf32>
    %184 = arith.addf %183, %182 : vector<8x128xf32>
    %185 = arith.divf %183, %184 : vector<8x128xf32>
    %186 = vector.extract_strided_slice %179 {offsets = [0, 128], sizes = [8, 128], strides = [1, 1]} : vector<8x512xf32> to vector<8x128xf32>
    %187 = arith.negf %186 : vector<8x128xf32>
    %188 = math.exp %187 : vector<8x128xf32>
    %cst_35 = arith.constant 1.000000e+00 : f32
    %189 = vector.broadcast %cst_35 : f32 to vector<8x128xf32>
    %190 = arith.addf %189, %188 : vector<8x128xf32>
    %191 = arith.divf %189, %190 : vector<8x128xf32>
    %192 = vector.extract_strided_slice %179 {offsets = [0, 256], sizes = [8, 128], strides = [1, 1]} : vector<8x512xf32> to vector<8x128xf32>
    %193 = math.tanh %192 : vector<8x128xf32>
    %194 = vector.extract_strided_slice %179 {offsets = [0, 384], sizes = [8, 128], strides = [1, 1]} : vector<8x512xf32> to vector<8x128xf32>
    %195 = arith.negf %194 : vector<8x128xf32>
    %196 = math.exp %195 : vector<8x128xf32>
    %cst_36 = arith.constant 1.000000e+00 : f32
    %197 = vector.broadcast %cst_36 : f32 to vector<8x128xf32>
    %198 = arith.addf %197, %196 : vector<8x128xf32>
    %199 = arith.divf %197, %198 : vector<8x128xf32>
    %200 = arith.mulf %191, %174 : vector<8x128xf32>
    %201 = arith.mulf %185, %193 : vector<8x128xf32>
    %202 = arith.addf %200, %201 : vector<8x128xf32>
    %203 = math.tanh %202 : vector<8x128xf32>
    %204 = arith.mulf %199, %203 : vector<8x128xf32>
    %cst_37 = arith.constant dense<0.000000e+00> : vector<8x512xf32>
    %205 = tpu.matmul %204, %6, %cst_37 {dimension_numbers = #tpu.dot_dimension_numbers<[1], [0], [0], [1], [0, 0, 1, 1], [], []>} : vector<8x128xf32>, vector<128x512xf32>, vector<8x512xf32> -> vector<8x512xf32>
    %206 = vector.extract_strided_slice %5 {offsets = [56, 0], sizes = [8, 512], strides = [1, 1]} : vector<64x512xf32> to vector<8x512xf32>
    %207 = arith.addf %205, %206 : vector<8x512xf32>
    %208 = vector.extract_strided_slice %207 {offsets = [0, 0], sizes = [8, 128], strides = [1, 1]} : vector<8x512xf32> to vector<8x128xf32>
    %209 = arith.negf %208 : vector<8x128xf32>
    %210 = math.exp %209 : vector<8x128xf32>
    %cst_38 = arith.constant 1.000000e+00 : f32
    %211 = vector.broadcast %cst_38 : f32 to vector<8x128xf32>
    %212 = arith.addf %211, %210 : vector<8x128xf32>
    %213 = arith.divf %211, %212 : vector<8x128xf32>
    %214 = vector.extract_strided_slice %207 {offsets = [0, 128], sizes = [8, 128], strides = [1, 1]} : vector<8x512xf32> to vector<8x128xf32>
    %215 = arith.negf %214 : vector<8x128xf32>
    %216 = math.exp %215 : vector<8x128xf32>
    %cst_39 = arith.constant 1.000000e+00 : f32
    %217 = vector.broadcast %cst_39 : f32 to vector<8x128xf32>
    %218 = arith.addf %217, %216 : vector<8x128xf32>
    %219 = arith.divf %217, %218 : vector<8x128xf32>
    %220 = vector.extract_strided_slice %207 {offsets = [0, 256], sizes = [8, 128], strides = [1, 1]} : vector<8x512xf32> to vector<8x128xf32>
    %221 = math.tanh %220 : vector<8x128xf32>
    %222 = vector.extract_strided_slice %207 {offsets = [0, 384], sizes = [8, 128], strides = [1, 1]} : vector<8x512xf32> to vector<8x128xf32>
    %223 = arith.negf %222 : vector<8x128xf32>
    %224 = math.exp %223 : vector<8x128xf32>
    %cst_40 = arith.constant 1.000000e+00 : f32
    %225 = vector.broadcast %cst_40 : f32 to vector<8x128xf32>
    %226 = arith.addf %225, %224 : vector<8x128xf32>
    %227 = arith.divf %225, %226 : vector<8x128xf32>
    %228 = arith.mulf %219, %202 : vector<8x128xf32>
    %229 = arith.mulf %213, %221 : vector<8x128xf32>
    %230 = arith.addf %228, %229 : vector<8x128xf32>
    %231 = math.tanh %230 : vector<8x128xf32>
    %232 = arith.mulf %227, %231 : vector<8x128xf32>
    %c0_41 = arith.constant 0 : index
    %c0_42 = arith.constant 0 : index
    %233 = vector.load %arg4[%c0_41, %c0_42] : memref<128x128xf32, #tpu.memory_space<vmem>>, vector<128x128xf32>
    %cst_43 = arith.constant dense<0.000000e+00> : vector<8x128xf32>
    %234 = tpu.matmul %232, %233, %cst_43 {dimension_numbers = #tpu.dot_dimension_numbers<[1], [0], [0], [1], [0, 0, 1, 1], [], []>} : vector<8x128xf32>, vector<128x128xf32>, vector<8x128xf32> -> vector<8x128xf32>
    %c0_44 = arith.constant 0 : index
    %c0_45 = arith.constant 0 : index
    %235 = vector.load %arg5[%c0_44, %c0_45] : memref<1x128xf32, #tpu.memory_space<vmem>>, vector<1x128xf32>
    %236 = vector.broadcast %235 : vector<1x128xf32> to vector<8x128xf32>
    %237 = arith.addf %234, %236 : vector<8x128xf32>
    %cst_46 = arith.constant 0.000000e+00 : f32
    %238 = vector.broadcast %cst_46 : f32 to vector<8x128xf32>
    %239 = arith.cmpf oge, %237, %238 : vector<8x128xf32>
    %cst_47 = arith.constant 0.00999999977 : f32
    %240 = vector.broadcast %cst_47 : f32 to vector<8x128xf32>
    %241 = arith.mulf %240, %237 : vector<8x128xf32>
    %242 = arith.select %239, %237, %241 : vector<8x128xi1>, vector<8x128xf32>
    %c0_48 = arith.constant 0 : index
    %c0_49 = arith.constant 0 : index
    %243 = vector.load %arg6[%c0_48, %c0_49] : memref<8x128xf32, #tpu.memory_space<vmem>>, vector<8x128xf32>
    tpu.vector_store %arg6[%c0_48, %c0_49], %242 {strides = array<i32>} : memref<8x128xf32, #tpu.memory_space<vmem>>, vector<8x128xf32>,
    return
  }
}

</mosaic_0001>

<bundles_post_ra>
// kernel: tpu_custom_call.1
= control target key start
LH: loop header
LB: loop body
LE: loop exit
PB: predicated region body
PF: predicated region fallthrough
CT: control target
= control target key end

     0   :  { %11 = vsyncpa [#allocation3], 0  ;;  %s2972_s0 = inlined_call_operand.vmem [shape: f32[64,32], index: 0, kind: input, shape index: {}]   ;;  %s2973_s1 = inlined_call_operand.hbm [shape: f32[32,512], index: 1, kind: input, shape index: {}]   ;;  %s2974_s2 = inlined_call_operand.vmem [shape: f32[1,512], index: 2, kind: input, shape index: {}]   ;;  %s2975_s3 = inlined_call_operand.hbm [shape: f32[128,512], index: 3, kind: input, shape index: {}]   ;;  %s2976_s4 = inlined_call_operand.hbm [shape: f32[128,128], index: 4, kind: input, shape index: {}]   ;;  %s2977_s5 = inlined_call_operand.vmem [shape: f32[1,128], index: 5, kind: input, shape index: {}]   ;;  %s2978_s6 = inlined_call_operand.hbm [shape: f32[8,128], index: 6, kind: output, shape index: {}]  }
   0x1   :  { %12 = vsyncpa [#allocation6], 0 }
   0x2   :  { %13 = vsyncpa [#allocation4], 0  ;;  %s35_s23 = sshll.u32 %s2975_s3, 4  ;;  %s1936_s24 = smov [#allocation5]   ;;  %s36_s23 = int_to_ptr.hbm [resolvable:$true] %s35_s23 }
   0x3   :  { %s37_s25 = sshll.u32 %s1936_s24, 4  ;;  %s20_s28 = sshll.u32 %s2973_s1, 4  ;;  %s38_s25 = int_to_ptr.vmem [resolvable:$true] %s37_s25  ;;  %s21_s28 = int_to_ptr.hbm [resolvable:$true] %s20_s28 }
   0x4   :  { %s1937_s29 = smov 512   ;;  %s1938_s30 = smov 32  }
   0x5   :  { %43 = dma.hbm_to_vmem [thread:$0]  %s36_s23, 8192, %s38_s25, [#allocation6], %s1937_s29, %s1937_s29, %s1938_s30  }
   0x6   :  { %s1939_s7 = smov [#allocation2]   ;;  %s48_s11 = sshll.u32 %s2976_s4, 4  ;;  %s49_s11 = int_to_ptr.hbm [resolvable:$true] %s48_s11 }
   0x7   :  { %s22_s8 = sshll.u32 %s1939_s7, 4  ;;  %s1940_s3 = smov [#allocation7]   ;;  %s23_s8 = int_to_ptr.vmem [resolvable:$true] %s22_s8 }
   0x8   :  { %28 = dma.hbm_to_vmem [thread:$0]  %s21_s28, 2048, %s23_s8, [#allocation3], %s1937_s29, %s1937_s29, %s1938_s30  }
   0x9   :  { %s50_s12 = sshll.u32 %s1940_s3, 4  ;;  %s1941_s13 = smov 128   ;;  %s51_s12 = int_to_ptr.vmem [resolvable:$true] %s50_s12 }
   0xa   :  { %s1942_s14 = smov 8  }
   0xb   :  { %56 = dma.hbm_to_vmem [thread:$0]  %s49_s11, 2048, %s51_s12, [#allocation6], %s1941_s13, %s1941_s13, %s1942_s14  }
   0xc   :  { %1930 = dma.done.wait [#allocation3], 2048  }
   0xd   :  { %1931 = vsyncadd [#allocation3], 4294965248 }
   0xe   :  { %1932 = dma.done.wait [#allocation6], 10240  }
   0xf   :  { %1933 = vsyncadd [#allocation6], 4294957056  ;;  %v91_v0 = vld [vmem:[#allocation2 + $0x60] sm:$0xff]  ;;  %vm105_vm0 = vcmask 261120   ;;  %v1995_v5 = vld [vmem:[%s2972_s0 + $0x28] sm:$0xff]  ;;  %s1944_s7 = smov [#allocation8]  }
  0x10   :  { %v87_v1 = vld [vmem:[#allocation2 + $0x40] sm:$0xff]  ;;  %142 = vmatpush.msra.mxu0 %v91_v0  ;;  %1620 = vmatpush.msra.mxu1 %v91_v0  ;;  %v2000_v6 = vld [vmem:[%s2972_s0 + $0x30] sm:$0xff]  ;;  %v2005_v7 = vld [vmem:[%s2972_s0 + $0x38] sm:$0xff]  ;;  %s1551_s8 = sshll.u32 %s1944_s7, 4  ;;  %s1553_s11 = sshll.u32 %s2978_s6, 4  ;;  %s1552_s8 = int_to_ptr.vmem [resolvable:$true] %s1551_s8  ;;  %s1554_s11 = int_to_ptr.hbm [resolvable:$true] %s1553_s11 }
  0x11   :  { %1621 = vmatpush.msra.mxu2 %v91_v0  ;;  %1622 = vmatpush.msra.mxu3 %v91_v0  ;;  %v83_v2 = vld [vmem:[#allocation2 + $0x20] sm:$0xff]  ;;  %v92_v8 = vld [vmem:[#allocation2 + $0x68] sm:$0xff]  ;;  %v93_v9 = vld [vmem:[#allocation2 + $0x70] sm:$0xff] }
  0x12   :  { %143 = vmatpush.msra.mxu0 %v87_v1  ;;  %1623 = vmatpush.msra.mxu1 %v87_v1  ;;  %v79_v3 = vld [vmem:[#allocation2] sm:$0xff]  ;;  %v94_v10 = vld [vmem:[#allocation2 + $0x78] sm:$0xff]  ;;  %v88_v12 = vld [vmem:[#allocation2 + $0x48] sm:$0xff] }
  0x13   :  { %1624 = vmatpush.msra.mxu2 %v87_v1  ;;  %1625 = vmatpush.msra.mxu3 %v87_v1  ;;  %v71_v4 = vld [vmem:[%s2972_s0] sm:$0xff]  ;;  %v89_v13 = vld [vmem:[#allocation2 + $0x50] sm:$0xff]  ;;  %v90_v14 = vld [vmem:[#allocation2 + $0x58] sm:$0xff] }
  0x14   :  { %144 = vmatpush.msra.mxu0 %v83_v2  ;;  %1626 = vmatpush.msra.mxu1 %v83_v2  ;;  %v2010_v11 = vld [vmem:[#allocation5 + $0x1e0] sm:$0xff]  ;;  %v84_v16 = vld [vmem:[#allocation2 + $0x28] sm:$0xff]  ;;  %v85_v17 = vld [vmem:[#allocation2 + $0x30] sm:$0xff] }
  0x15   :  { %1627 = vmatpush.msra.mxu2 %v83_v2  ;;  %1628 = vmatpush.msra.mxu3 %v83_v2  ;;  %3079 = vst [vmem:[#allocation12_spill] sm:$0xff] %v2010_v11  ;;  %v2016_v15 = vld [vmem:[#allocation5 + $0x1c0] sm:$0xff]  ;;  %v86_v18 = vld [vmem:[#allocation2 + $0x38] sm:$0xff]  ;;  %v80_v20 = vld [vmem:[#allocation2 + $0x8] sm:$0xff] }
  0x16   :  { %145 = vmatpush.msra.mxu0 %v79_v3  ;;  %1629 = vmatpush.msra.mxu1 %v79_v3  ;;  %v2019_v19 = vld [vmem:[#allocation5 + $0x1a0] sm:$0xff]  ;;  %v81_v21 = vld [vmem:[#allocation2 + $0x10] sm:$0xff]  ;;  %v82_v22 = vld [vmem:[#allocation2 + $0x18] sm:$0xff] }
  0x17   :  { %1630 = vmatpush.msra.mxu2 %v79_v3  ;;  %1631 = vmatpush.msra.mxu3 %v79_v3  ;;  %v72_v23 = vld [vmem:[%s2972_s0 + $0x8] sm:$0xff]  ;;  %v2029_v25 = vld [vmem:[#allocation5 + $0x1f8] sm:$0xff]  ;;  %v2031_v26 = vld [vmem:[#allocation5 + $0x180] sm:$0xff] }
  0x18   :  { %1564 = vmatmul.msk.f32.vlgmr.msra.gmra.mxu0 %vm105_vm0, %v71_v4  ;;  %1569 = vmatmul.msk.f32.vlgmr.msra.gmra.mxu1 %vm105_vm0, %v1995_v5  ;;  %v2026_v24 = vld [vmem:[#allocation5 + $0x1e8] sm:$0xff]  ;;  %v2037_v28 = vld [vmem:[#allocation5 + $0x1f0] sm:$0xff]  ;;  %v2041_v29 = vld [vmem:[#allocation5 + $0x160] sm:$0xff] }
  0x19   :  { %1570 = vmatmul.msk.f32.vlgmr.msra.gmra.mxu2 %vm105_vm0, %v2000_v6  ;;  %1571 = vmatmul.msk.f32.vlgmr.msra.gmra.mxu3 %vm105_vm0, %v2005_v7  ;;  %v2035_v27 = vld [vmem:[#allocation5 + $0x1c8] sm:$0xff]  ;;  %v2043_v30 = vld [vmem:[#allocation5 + $0x1d8] sm:$0xff]  ;;  %v2049_v32 = vld [vmem:[#allocation5 + $0x1d0] sm:$0xff] }
  0x1a   :  { %183 = vmatpush.msrb.mxu1 %v92_v8  ;;  %224 = vmatpush.msrb.mxu2 %v93_v9  ;;  %v2047_v31 = vld [vmem:[#allocation5 + $0x1a8] sm:$0xff]  ;;  %v2052_v33 = vld [vmem:[#allocation5 + $0x140] sm:$0xff]  ;;  %v2054_v34 = vld [vmem:[#allocation5 + $0x1b8] sm:$0xff] }
  0x1b   :  { %265 = vmatpush.msrb.mxu3 %v94_v10  ;;  %358 = vmatpush.msrb.mxu0 %v2010_v11  ;;  %v73_v35 = vld [vmem:[%s2972_s0 + $0x10] sm:$0xff]  ;;  %v2062_v36 = vld [vmem:[#allocation5 + $0x188] sm:$0xff]  ;;  %v2067_v37 = vld [vmem:[#allocation5 + $0x120] sm:$0xff] }
  0x1c   :  { %184 = vmatpush.msrb.mxu1 %v88_v12  ;;  %225 = vmatpush.msrb.mxu2 %v89_v13  ;;  %v2072_v38 = vld [vmem:[#allocation5 + $0x168] sm:$0xff]  ;;  %v2074_v39 = vld [vmem:[#allocation5 + $0x198] sm:$0xff]  ;;  %v2078_v40 = vld [vmem:[#allocation5 + $0x100] sm:$0xff] }
  0x1d   :  { %266 = vmatpush.msrb.mxu3 %v90_v14  ;;  %359 = vmatpush.msrb.mxu0 %v2016_v15  ;;  %v2080_v41 = vld [vmem:[#allocation5 + $0x1b0] sm:$0xff]  ;;  %v2084_v42 = vld [vmem:[#allocation5 + $0x148] sm:$0xff]  ;;  %v2086_v43 = vld [vmem:[#allocation5 + $0x178] sm:$0xff] }
  0x1e   :  { %185 = vmatpush.msrb.mxu1 %v84_v16  ;;  %226 = vmatpush.msrb.mxu2 %v85_v17  ;;  %v2089_v44 = vld [vmem:[#allocation5 + $0xe0] sm:$0xff]  ;;  %v2092_v45 = vld [vmem:[#allocation5 + $0x190] sm:$0xff]  ;;  %v2096_v46 = vld [vmem:[#allocation5 + $0x128] sm:$0xff] }
  0x1f   :  { %267 = vmatpush.msrb.mxu3 %v86_v18  ;;  %360 = vmatpush.msrb.mxu0 %v2019_v19  ;;  %v2098_v47 = vld [vmem:[#allocation5 + $0x158] sm:$0xff]  ;;  %v2105_v49 = vld [vmem:[#allocation5 + $0x170] sm:$0xff]  ;;  %v2109_v50 = vld [vmem:[#allocation5 + $0xc0] sm:$0xff] }
  0x20   :  { %186 = vmatpush.msrb.mxu1 %v80_v20  ;;  %227 = vmatpush.msrb.mxu2 %v81_v21  ;;  %v74_v48 = vld [vmem:[%s2972_s0 + $0x18] sm:$0xff]  ;;  %v2114_v51 = vld [vmem:[#allocation5 + $0x108] sm:$0xff]  ;;  %v2121_v53 = vld [vmem:[#allocation5 + $0xa0] sm:$0xff]  ;;  %v2981_v21 = vmov 0.0  }
  0x21   :  { %268 = vmatpush.msrb.mxu3 %v82_v22  ;;  %1565 = vmatmul.msk.f32.gmra.mxu0 %vm105_vm0, %v72_v23  ;;  %v2116_v52 = vld [vmem:[#allocation5 + $0x138] sm:$0xff]  ;;  %3080 = vst [vmem:[#allocation13_spill] sm:$0xff] %v2121_v53  ;;  %v2123_v54 = vld [vmem:[#allocation5 + $0x150] sm:$0xff]  ;;  %v2127_v55 = vld [vmem:[#allocation5 + $0xe8] sm:$0xff] }
  0x22   :  { %1572 = vmatmul.msk.f32.vlgmr.msrb.gmra.mxu1 %vm105_vm0, %v71_v4  ;;  %1580 = vmatmul.msk.f32.vlgmr.msrb.gmra.mxu2 %vm105_vm0, %v71_v4  ;;  %v2129_v56 = vld [vmem:[#allocation5 + $0x118] sm:$0xff]  ;;  %v2131_v57 = vld [vmem:[#allocation5 + $0x80] sm:$0xff]  ;;  %v2135_v58 = vld [vmem:[#allocation5 + $0x130] sm:$0xff] }
  0x23   :  { %1588 = vmatmul.msk.f32.vlgmr.msrb.gmra.mxu3 %vm105_vm0, %v71_v4  ;;  %378 = vmatpush.msra.mxu1 %v2026_v24  ;;  %3081 = vst [vmem:[#allocation14_spill] sm:$0xff] %v2131_v57  ;;  %v2139_v59 = vld [vmem:[#allocation5 + $0xc8] sm:$0xff]  ;;  %v2141_v60 = vld [vmem:[#allocation5 + $0xf8] sm:$0xff]  ;;  %v75_v61 = vld [vmem:[%s2972_s0 + $0x20] sm:$0xff] }
  0x24   :  { %418 = vmatpush.msra.mxu3 %v2029_v25  ;;  %361 = vmatpush.msrb.mxu0 %v2031_v26  ;;  %v2148_v62 = vld [vmem:[#allocation5 + $0x110] sm:$0xff]  ;;  %v2152_v63 = vld [vmem:[#allocation5 + $0x60] sm:$0xff]  ;;  %v2157_v0 = vld [vmem:[#allocation5 + $0xa8] sm:$0xff] }
  0x25   :  { %379 = vmatpush.msra.mxu1 %v2035_v27  ;;  %398 = vmatpush.msra.mxu2 %v2037_v28  ;;  %3082 = vst [vmem:[#allocation15_spill] sm:$0xff] %v2152_v63  ;;  %v2159_v1 = vld [vmem:[#allocation5 + $0xd8] sm:$0xff]  ;;  %v2164_v2 = vld [vmem:[#allocation5 + $0x40] sm:$0xff]  ;;  %v2166_v3 = vld [vmem:[#allocation5 + $0xf0] sm:$0xff] }
  0x26   :  { %362 = vmatpush.msrb.mxu0 %v2041_v29  ;;  %419 = vmatpush.msra.mxu3 %v2043_v30  ;;  %3083 = vst [vmem:[#allocation16_spill] sm:$0xff] %v2157_v0  ;;  %v2170_v4 = vld [vmem:[#allocation5 + $0x88] sm:$0xff]  ;;  %v2172_v8 = vld [vmem:[#allocation5 + $0xb8] sm:$0xff]  ;;  %v2174_v9 = vld [vmem:[#allocation5 + $0x20] sm:$0xff] }
  0x27   :  { %380 = vmatpush.msra.mxu1 %v2047_v31  ;;  %399 = vmatpush.msra.mxu2 %v2049_v32  ;;  %3084 = vst [vmem:[#allocation17_spill] sm:$0xff] %v2159_v1  ;;  %v2178_v10 = vld [vmem:[#allocation5 + $0xd0] sm:$0xff]  ;;  %v2182_v12 = vld [vmem:[#allocation5 + $0x68] sm:$0xff]  ;;  %v2184_v13 = vld [vmem:[#allocation5 + $0x98] sm:$0xff] }
  0x28   :  { %363 = vmatpush.msrb.mxu0 %v2052_v33  ;;  %420 = vmatpush.msra.mxu3 %v2054_v34  ;;  %3085 = vst [vmem:[#allocation18_spill] sm:$0xff] %v2164_v2  ;;  %v2186_v14 = vld [vmem:[#allocation5] sm:$0xff]  ;;  %v2190_v16 = vld [vmem:[#allocation5 + $0xb0] sm:$0xff]  ;;  %v2197_v17 = vld [vmem:[#allocation5 + $0x48] sm:$0xff] }
  0x29   :  { %1566 = vmatmul.msk.f32.gmra.mxu0 %vm105_vm0, %v73_v35  ;;  %381 = vmatpush.msra.mxu1 %v2062_v36  ;;  %3086 = vst [vmem:[#allocation19_spill] sm:$0xff] %v2170_v4  ;;  %v2200_v18 = vld [vmem:[#allocation5 + $0x78] sm:$0xff]  ;;  %v2204_v20 = vld [vmem:[#allocation5 + $0x90] sm:$0xff]  ;;  %v2208_v22 = vld [vmem:[#allocation5 + $0x28] sm:$0xff] }
  0x2a   :  { %1573 = vmatmul.msk.f32.gmra.mxu1 %vm105_vm0, %v72_v23  ;;  %1581 = vmatmul.msk.f32.gmra.mxu2 %vm105_vm0, %v72_v23  ;;  %3087 = vst [vmem:[#allocation20_spill] sm:$0xff] %v2172_v8 }
  0x2b   :  { %1589 = vmatmul.msk.f32.gmra.mxu3 %vm105_vm0, %v72_v23  ;;  %364 = vmatpush.msrb.mxu0 %v2067_v37  ;;  %3088 = vst [vmem:[#allocation21_spill] sm:$0xff] %v2174_v9  ;;  %v2210_v23 = vld [vmem:[#allocation5 + $0x58] sm:$0xff] }
  0x2c   :  { %382 = vmatpush.msra.mxu1 %v2072_v38  ;;  %421 = vmatpush.msra.mxu3 %v2074_v39  ;;  %3089 = vst [vmem:[#allocation22_spill] sm:$0xff] %v2178_v10 }
  0x2d   :  { %365 = vmatpush.msrb.mxu0 %v2078_v40  ;;  %400 = vmatpush.msra.mxu2 %v2080_v41  ;;  %3090 = vst [vmem:[#allocation23_spill] sm:$0xff] %v2182_v12 }
  0x2e   :  { %383 = vmatpush.msra.mxu1 %v2084_v42  ;;  %422 = vmatpush.msra.mxu3 %v2086_v43  ;;  %3091 = vst [vmem:[#allocation24_spill] sm:$0xff] %v2184_v13 }
  0x2f   :  { %366 = vmatpush.msrb.mxu0 %v2089_v44  ;;  %401 = vmatpush.msra.mxu2 %v2092_v45  ;;  %3092 = vst [vmem:[#allocation25_spill] sm:$0xff] %v2186_v14 }
  0x30   :  { %384 = vmatpush.msra.mxu1 %v2096_v46  ;;  %423 = vmatpush.msra.mxu3 %v2098_v47  ;;  %3093 = vst [vmem:[#allocation26_spill] sm:$0xff] %v2190_v16 }
  0x31   :  { %1567 = vmatmul.msk.f32.gmra.mxu0 %vm105_vm0, %v74_v48  ;;  %402 = vmatpush.msra.mxu2 %v2105_v49  ;;  %3094 = vst [vmem:[#allocation27_spill] sm:$0xff] %v2197_v17 }
  0x32   :  { %1574 = vmatmul.msk.f32.gmra.mxu1 %vm105_vm0, %v73_v35  ;;  %1582 = vmatmul.msk.f32.gmra.mxu2 %vm105_vm0, %v73_v35  ;;  %3095 = vst [vmem:[#allocation28_spill] sm:$0xff] %v2200_v18 }
  0x33   :  { %1590 = vmatmul.msk.f32.gmra.mxu3 %vm105_vm0, %v73_v35  ;;  %367 = vmatpush.msrb.mxu0 %v2109_v50  ;;  %3096 = vst [vmem:[#allocation29_spill] sm:$0xff] %v2204_v20  ;;  %v2214_v35 = vld [vmem:[#allocation5 + $0x70] sm:$0xff] }
  0x34   :  { %385 = vmatpush.msra.mxu1 %v2114_v51  ;;  %424 = vmatpush.msra.mxu3 %v2116_v52  ;;  %3097 = vst [vmem:[#allocation30_spill] sm:$0xff] %v2208_v22 }
  0x35   :  { %368 = vmatpush.msrb.mxu0 %v2121_v53  ;;  %403 = vmatpush.msra.mxu2 %v2123_v54  ;;  %3098 = vst [vmem:[#allocation31_spill] sm:$0xff] %v2210_v23 }
  0x36   :  { %386 = vmatpush.msra.mxu1 %v2127_v55  ;;  %425 = vmatpush.msra.mxu3 %v2129_v56  ;;  %3099 = vst [vmem:[#allocation32_spill] sm:$0xff] %v2214_v35 }
  0x37   :  { %369 = vmatpush.msrb.mxu0 %v2131_v57  ;;  %404 = vmatpush.msra.mxu2 %v2135_v58 }
  0x38   :  { %387 = vmatpush.msra.mxu1 %v2139_v59  ;;  %426 = vmatpush.msra.mxu3 %v2141_v60 }
  0x39   :  { %1568 = vmatmul.msk.f32.gmra.mxu0 %vm105_vm0, %v75_v61  ;;  %405 = vmatpush.msra.mxu2 %v2148_v62 }
  0x3a   :  { %1575 = vmatmul.msk.f32.gmra.mxu1 %vm105_vm0, %v74_v48  ;;  %1583 = vmatmul.msk.f32.gmra.mxu2 %vm105_vm0, %v74_v48 }
  0x3b   :  { %1591 = vmatmul.msk.f32.gmra.mxu3 %vm105_vm0, %v74_v48  ;;  %370 = vmatpush.msrb.mxu0 %v2152_v63  ;;  %v2217_v48 = vld [vmem:[#allocation5 + $0x8] sm:$0xff] }
  0x3c   :  { %388 = vmatpush.msra.mxu1 %v2157_v0  ;;  %427 = vmatpush.msra.mxu3 %v2159_v1  ;;  %3100 = vst [vmem:[#allocation33_spill] sm:$0xff] %v2217_v48 }
  0x3d   :  { %371 = vmatpush.msrb.mxu0 %v2164_v2  ;;  %406 = vmatpush.msra.mxu2 %v2166_v3 }
  0x3e   :  { %389 = vmatpush.msra.mxu1 %v2170_v4  ;;  %428 = vmatpush.msra.mxu3 %v2172_v8 }
  0x3f   :  { %372 = vmatpush.msrb.mxu0 %v2174_v9  ;;  %407 = vmatpush.msra.mxu2 %v2178_v10  ;;  %v2233_v9 = vld [vmem:[#allocation5 + $0x18] sm:$0xff] }
  0x40   :  { %390 = vmatpush.msra.mxu1 %v2182_v12  ;;  %429 = vmatpush.msra.mxu3 %v2184_v13  ;;  %3104 = vst [vmem:[#allocation37_spill] sm:$0xff] %v2233_v9 }
  0x41   :  { %373 = vmatpush.msrb.mxu0 %v2186_v14  ;;  %408 = vmatpush.msra.mxu2 %v2190_v16  ;;  %v2219_v14 = vld [vmem:[#allocation5 + $0x38] sm:$0xff] }
  0x42   :  { %1576 = vmatmul.msk.f32.gmra.mxu1 %vm105_vm0, %v75_v61  ;;  %1584 = vmatmul.msk.f32.gmra.mxu2 %vm105_vm0, %v75_v61  ;;  %3101 = vst [vmem:[#allocation34_spill] sm:$0xff] %v2219_v14 }
  0x43   :  { %1592 = vmatmul.msk.f32.gmra.mxu3 %vm105_vm0, %v75_v61  ;;  %374 = vmatmul.f32.vlgmr.msrb.gmra.mxu0 %v2981_v21  ;;  %v2224_v61 = vld [vmem:[#allocation5 + $0x50] sm:$0xff] }
  0x44   :  { %391 = vmatpush.msra.mxu1 %v2197_v17  ;;  %430 = vmatpush.msra.mxu3 %v2200_v18  ;;  %3102 = vst [vmem:[#allocation35_spill] sm:$0xff] %v2224_v61  ;;  %v2229_v21 = vld [vmem:[#allocation5 + $0x30] sm:$0xff] }
  0x45   :  { %409 = vmatpush.msra.mxu2 %v2204_v20  ;;  %501 = vmatpush.msra.mxu0 %v2010_v11  ;;  %3103 = vst [vmem:[#allocation36_spill] sm:$0xff] %v2229_v21  ;;  %v2240_v11 = vld [vmem:[#allocation5 + $0x10] sm:$0xff] }
  0x46   :  { %392 = vmatpush.msra.mxu1 %v2208_v22  ;;  %431 = vmatpush.msra.mxu3 %v2210_v23  ;;  %3105 = vst [vmem:[#allocation38_spill] sm:$0xff] %v2240_v11 }
  0x47   :  { %410 = vmatpush.msra.mxu2 %v2214_v35  ;;  %502 = vmatpush.msra.mxu0 %v2016_v15 }
  0x48   :  { %393 = vmatpush.msra.mxu1 %v2217_v48  ;;  %432 = vmatpush.msra.mxu3 %v2219_v14 }
  0x49   :  { %411 = vmatpush.msra.mxu2 %v2224_v61  ;;  %503 = vmatpush.msra.mxu0 %v2019_v19 }
  0x4a   :  { %521 = vmatpush.msrb.mxu1 %v2026_v24  ;;  %1585 = vmatmul.msk.f32.gmra.mxu2 %vm105_vm0, %v1995_v5 }
  0x4b   :  { %1577 = vmatmul.msk.f32.gmra.mxu1 %vm105_vm0, %v1995_v5  ;;  %1593 = vmatmul.msk.f32.gmra.mxu3 %vm105_vm0, %v1995_v5  ;;  %v3106_v5 = vmov 0.0  }
  0x4c   :  { %412 = vmatpush.msra.mxu2 %v2229_v21  ;;  %433 = vmatpush.msra.mxu3 %v2233_v9 }
  0x4d   :  { %522 = vmatpush.msrb.mxu1 %v2035_v27  ;;  %504 = vmatpush.msra.mxu0 %v2031_v26 }
  0x4e   :  { %413 = vmatpush.msra.mxu2 %v2240_v11  ;;  %561 = vmatpush.msrb.mxu3 %v2029_v25 }
  0x4f   :  { %523 = vmatpush.msrb.mxu1 %v2047_v31  ;;  %505 = vmatpush.msra.mxu0 %v2041_v29 }
  0x50   :  { %541 = vmatpush.msrb.mxu2 %v2037_v28  ;;  %562 = vmatpush.msrb.mxu3 %v2043_v30 }
  0x51   :  { %524 = vmatpush.msrb.mxu1 %v2062_v36  ;;  %506 = vmatpush.msra.mxu0 %v2052_v33 }
  0x52   :  { %542 = vmatpush.msrb.mxu2 %v2049_v32  ;;  %563 = vmatpush.msrb.mxu3 %v2054_v34 }
  0x53   :  { %1578 = vmatmul.msk.f32.gmra.mxu1 %vm105_vm0, %v2000_v6  ;;  %1586 = vmatmul.msk.f32.gmra.mxu2 %vm105_vm0, %v2000_v6 }
  0x54   :  { %1594 = vmatmul.msk.f32.gmra.mxu3 %vm105_vm0, %v2000_v6  ;;  %543 = vmatpush.msrb.mxu2 %v2080_v41  ;;  %v3107_v6 = vld [vmem:[#allocation21_spill] sm:$0xff] }
  0x55   :  { %564 = vmatpush.msrb.mxu3 %v2074_v39  ;;  %525 = vmatpush.msrb.mxu1 %v2072_v38 }
  0x56   :  { %544 = vmatpush.msrb.mxu2 %v2092_v45  ;;  %507 = vmatpush.msra.mxu0 %v2067_v37 }
  0x57   :  { %565 = vmatpush.msrb.mxu3 %v2086_v43  ;;  %526 = vmatpush.msrb.mxu1 %v2084_v42 }
  0x58   :  { %545 = vmatpush.msrb.mxu2 %v2105_v49  ;;  %508 = vmatpush.msra.mxu0 %v2078_v40 }
  0x59   :  { %566 = vmatpush.msrb.mxu3 %v2098_v47  ;;  %527 = vmatpush.msrb.mxu1 %v2096_v46 }
  0x5a   :  { %546 = vmatpush.msrb.mxu2 %v2123_v54  ;;  %509 = vmatpush.msra.mxu0 %v2089_v44 }
  0x5b   :  { %1579 = vmatmul.msk.f32.gmra.mxu1 %vm105_vm0, %v2005_v7  ;;  %1587 = vmatmul.msk.f32.gmra.mxu2 %vm105_vm0, %v2005_v7 }
  0x5c   :  { %1595 = vmatmul.msk.f32.gmra.mxu3 %vm105_vm0, %v2005_v7  ;;  %547 = vmatpush.msrb.mxu2 %v2135_v58  ;;  %v3108_v7 = vld [vmem:[#allocation25_spill] sm:$0xff] }
  0x5d   :  { %567 = vmatpush.msrb.mxu3 %v2116_v52  ;;  %528 = vmatpush.msrb.mxu1 %v2114_v51 }
  0x5e   :  { %548 = vmatpush.msrb.mxu2 %v2148_v62  ;;  %510 = vmatpush.msra.mxu0 %v2109_v50 }
  0x5f   :  { %568 = vmatpush.msrb.mxu3 %v2129_v56  ;;  %529 = vmatpush.msrb.mxu1 %v2127_v55 }
  0x60   :  { %549 = vmatpush.msrb.mxu2 %v2166_v3  ;;  %511 = vmatpush.msra.mxu0 %v2121_v53 }
  0x61   :  { %569 = vmatpush.msrb.mxu3 %v2141_v60  ;;  %530 = vmatpush.msrb.mxu1 %v2139_v59 }
  0x62   :  { %550 = vmatpush.msrb.mxu2 %v2178_v10  ;;  %512 = vmatpush.msra.mxu0 %v2131_v57 }
  0x63   :  { %394 = vmatmul.f32.vlgmr.msra.gmra.mxu1 %v3106_v5  ;;  %414 = vmatmul.f32.vlgmr.msra.gmra.mxu2 %v3106_v5 }
  0x64   :  { %434 = vmatmul.f32.vlgmr.msra.gmra.mxu3 %v3106_v5  ;;  %531 = vmatpush.msrb.mxu1 %v2157_v0  ;;  %v3109_v5 = vld [vmem:[#allocation12_spill] sm:$0xff] }
  0x65   :  { %570 = vmatpush.msrb.mxu3 %v2159_v1  ;;  %551 = vmatpush.msrb.mxu2 %v2190_v16 }
  0x66   :  { %532 = vmatpush.msrb.mxu1 %v2170_v4  ;;  %513 = vmatpush.msra.mxu0 %v2152_v63 }
  0x67   :  { %571 = vmatpush.msrb.mxu3 %v2172_v8  ;;  %552 = vmatpush.msrb.mxu2 %v2204_v20 }
  0x68   :  { %533 = vmatpush.msrb.mxu1 %v2182_v12  ;;  %514 = vmatpush.msra.mxu0 %v2164_v2 }
  0x69   :  { %572 = vmatpush.msrb.mxu3 %v2184_v13  ;;  %553 = vmatpush.msrb.mxu2 %v2214_v35 }
  0x6a   :  { %534 = vmatpush.msrb.mxu1 %v2197_v17  ;;  %515 = vmatpush.msra.mxu0 %v3107_v6 }
  0x6b   :  { %573 = vmatpush.msrb.mxu3 %v2200_v18  ;;  %554 = vmatpush.msrb.mxu2 %v2224_v61 }
  0x6c   :  { %535 = vmatpush.msrb.mxu1 %v2208_v22  ;;  %516 = vmatpush.msra.mxu0 %v3108_v7 }
  0x6d   :  { %574 = vmatpush.msrb.mxu3 %v2210_v23  ;;  %555 = vmatpush.msrb.mxu2 %v2229_v21 }
  0x6e   :  { %536 = vmatpush.msrb.mxu1 %v2217_v48  ;;  %644 = vmatpush.msrb.mxu0 %v3109_v5 }
  0x6f   :  { %575 = vmatpush.msrb.mxu3 %v2219_v14  ;;  %556 = vmatpush.msrb.mxu2 %v2240_v11 }
  0x70   :  { %664 = vmatpush.msra.mxu1 %v2026_v24  ;;  %645 = vmatpush.msrb.mxu0 %v2016_v15 }
  0x71   :  { %576 = vmatpush.msrb.mxu3 %v2233_v9  ;;  %684 = vmatpush.msra.mxu2 %v2037_v28 }
  0x72   :  { %665 = vmatpush.msra.mxu1 %v2035_v27  ;;  %646 = vmatpush.msrb.mxu0 %v2019_v19 }
  0x73   :  { %704 = vmatpush.msra.mxu3 %v2029_v25  ;;  %685 = vmatpush.msra.mxu2 %v2049_v32 }
  0x74   :  { %666 = vmatpush.msra.mxu1 %v2047_v31  ;;  %647 = vmatpush.msrb.mxu0 %v2031_v26 }
  0x75   :  { %705 = vmatpush.msra.mxu3 %v2043_v30  ;;  %686 = vmatpush.msra.mxu2 %v2080_v41 }
  0x76   :  { %667 = vmatpush.msra.mxu1 %v2062_v36  ;;  %648 = vmatpush.msrb.mxu0 %v2041_v29 }
  0x77   :  { %706 = vmatpush.msra.mxu3 %v2054_v34  ;;  %687 = vmatpush.msra.mxu2 %v2092_v45 }
  0x78   :  { %668 = vmatpush.msra.mxu1 %v2072_v38  ;;  %649 = vmatpush.msrb.mxu0 %v2052_v33 }
  0x79   :  { %707 = vmatpush.msra.mxu3 %v2074_v39  ;;  %688 = vmatpush.msra.mxu2 %v2105_v49 }
  0x7a   :  { %669 = vmatpush.msra.mxu1 %v2084_v42  ;;  %650 = vmatpush.msrb.mxu0 %v2067_v37 }
  0x7b   :  { %708 = vmatpush.msra.mxu3 %v2086_v43  ;;  %689 = vmatpush.msra.mxu2 %v2123_v54 }
  0x7c   :  { %670 = vmatpush.msra.mxu1 %v2096_v46  ;;  %651 = vmatpush.msrb.mxu0 %v2078_v40 }
  0x7d   :  { %709 = vmatpush.msra.mxu3 %v2098_v47  ;;  %690 = vmatpush.msra.mxu2 %v2135_v58 }
  0x7e   :  { %671 = vmatpush.msra.mxu1 %v2114_v51  ;;  %652 = vmatpush.msrb.mxu0 %v2089_v44 }
  0x7f   :  { %710 = vmatpush.msra.mxu3 %v2116_v52  ;;  %691 = vmatpush.msra.mxu2 %v2148_v62 }
  0x80   :  { %672 = vmatpush.msra.mxu1 %v2127_v55  ;;  %653 = vmatpush.msrb.mxu0 %v2109_v50 }
  0x81   :  { %711 = vmatpush.msra.mxu3 %v2129_v56  ;;  %692 = vmatpush.msra.mxu2 %v2166_v3 }
  0x82   :  { %673 = vmatpush.msra.mxu1 %v2139_v59  ;;  %654 = vmatpush.msrb.mxu0 %v2121_v53 }
  0x83   :  { %712 = vmatpush.msra.mxu3 %v2141_v60  ;;  %693 = vmatpush.msra.mxu2 %v2178_v10 }
  0x84   :  { %674 = vmatpush.msra.mxu1 %v2157_v0  ;;  %655 = vmatpush.msrb.mxu0 %v2131_v57 }
  0x85   :  { %713 = vmatpush.msra.mxu3 %v2159_v1  ;;  %694 = vmatpush.msra.mxu2 %v2190_v16 }
  0x86   :  { %675 = vmatpush.msra.mxu1 %v2170_v4  ;;  %656 = vmatpush.msrb.mxu0 %v2152_v63 }
  0x87   :  { %714 = vmatpush.msra.mxu3 %v2172_v8  ;;  %695 = vmatpush.msra.mxu2 %v2204_v20 }
  0x88   :  { %676 = vmatpush.msra.mxu1 %v2182_v12  ;;  %657 = vmatpush.msrb.mxu0 %v2164_v2 }
  0x89   :  { %715 = vmatpush.msra.mxu3 %v2184_v13  ;;  %696 = vmatpush.msra.mxu2 %v2214_v35 }
  0x8a   :  { %677 = vmatpush.msra.mxu1 %v2197_v17  ;;  %658 = vmatpush.msrb.mxu0 %v3107_v6  ;;  %v95_v17 = vld [vmem:[%s2974_s2] sm:$0xf] }
  0x8b   :  { %716 = vmatpush.msra.mxu3 %v2200_v18  ;;  %697 = vmatpush.msra.mxu2 %v2224_v61  ;;  %v2406_v20 = vperm.slane %v95_v17, 2 }
  0x8c   :  { %678 = vmatpush.msra.mxu1 %v2208_v22  ;;  %659 = vmatpush.msrb.mxu0 %v3108_v7 }
  0x8d   :  { %717 = vmatpush.msra.mxu3 %v2210_v23  ;;  %698 = vmatpush.msra.mxu2 %v2229_v21  ;;  %v97_v23 = vperm.slane %v95_v17, 0 }
  0x8e   :  { %679 = vmatpush.msra.mxu1 %v2217_v48 }
  0x8f   :  { %718 = vmatpush.msra.mxu3 %v2219_v14  ;;  %699 = vmatpush.msra.mxu2 %v2240_v11  ;;  %v98_v11 = vperm.slane %v95_v17, 1 }
  0x91   :  { %719 = vmatpush.msra.mxu3 %v2233_v9 }
  0x95   :  { %v147_v6 = vpop.f32.mrf.mxu0  ;;  %v162_v61 = vpop.f32.mrf.mxu1 }
  0x96   :  { %v2390_v22 = vadd.f32 %v162_v61, %v97_v23 }
  0x98   :  { %3110 = vst [vmem:[#allocation12_spill] sm:$0xff] %v2390_v22 }
  0x9c   :  { %v165_v21 = vpop.f32.mrf.mxu2  ;;  %v168_v2 = vpop.f32.mrf.mxu3 }
  0x9d   :  { %v2392_v14 = vadd.f32 %v165_v21, %v97_v23  ;;  %v2394_v7 = vadd.f32 %v168_v2, %v97_v23  ;;  %v100_v21 = vperm.slane %v95_v17, 3 }
  0x9e   :  { %v150_v48 = vpop.f32.mrf.mxu0 }
  0x9f   :  { %3111 = vst [vmem:[#allocation39_spill] sm:$0xff] %v2392_v14  ;;  %v2396_v18 = vadd.f32 %v150_v48, %v97_v23  ;;  %v188_v35 = vpop.f32.mrf.mxu1 }
  0xa0   :  { %3112 = vst [vmem:[#allocation40_spill] sm:$0xff] %v2394_v7 }
  0xa1   :  { %3113 = vst [vmem:[#allocation41_spill] sm:$0xff] %v2396_v18 }
  0xa5   :  { %v2398_v12 = vpop.f32.mrf.mxu2 }
  0xa6   :  { %v2400_v63 = vpop.f32.mrf.mxu3  ;;  %v153_v9 = vpop.f32.mrf.mxu0 }
  0xa7   :  { %v2402_v13 = vadd.f32 %v153_v9, %v97_v23  ;;  %v191_v61 = vpop.f32.mrf.mxu1 }
  0xa8   :  { %v2404_v22 = vadd.f32 %v191_v61, %v98_v11 }
  0xa9   :  { %3114 = vst [vmem:[#allocation42_spill] sm:$0xff] %v2402_v13 }
  0xaa   :  { %3115 = vst [vmem:[#allocation43_spill] sm:$0xff] %v2404_v22 }
  0xad   :  { %v232_v2 = vpop.f32.mrf.mxu2 }
  0xae   :  { %v2409_v7 = vadd.f32 %v232_v2, %v2406_v20  ;;  %v273_v48 = vpop.f32.mrf.mxu3  ;;  %v156_v14 = vpop.f32.mrf.mxu0 }
  0xaf   :  { %v2411_v18 = vadd.f32 %v273_v48, %v100_v21  ;;  %v2413_v4 = vadd.f32 %v156_v14, %v97_v23  ;;  %v194_v57 = vpop.f32.mrf.mxu1 }
  0xb0   :  { %3116 = vst [vmem:[#allocation44_spill] sm:$0xff] %v2409_v7  ;;  %v2415_v8 = vadd.f32 %v194_v57, %v98_v11 }
  0xb1   :  { %3117 = vst [vmem:[#allocation45_spill] sm:$0xff] %v2411_v18 }
  0xb2   :  { %3118 = vst [vmem:[#allocation46_spill] sm:$0xff] %v2413_v4 }
  0xb3   :  { %3119 = vst [vmem:[#allocation47_spill] sm:$0xff] %v2415_v8 }
  0xb5   :  { %v235_v9 = vpop.f32.mrf.mxu2 }
  0xb6   :  { %v2418_v61 = vadd.f32 %v235_v9, %v2406_v20  ;;  %v276_v13 = vpop.f32.mrf.mxu3  ;;  %v159_v22 = vpop.f32.mrf.mxu0 }
  0xb7   :  { %v2420_v17 = vadd.f32 %v276_v13, %v100_v21  ;;  %v2422_v16 = vadd.f32 %v159_v22, %v97_v23  ;;  %v197_v2 = vpop.f32.mrf.mxu1 }
  0xb8   :  { %3120 = vst [vmem:[#allocation48_spill] sm:$0xff] %v2418_v61  ;;  %v2424_v7 = vadd.f32 %v197_v2, %v98_v11 }
  0xb9   :  { %3121 = vst [vmem:[#allocation49_spill] sm:$0xff] %v2420_v17  ;;  %v148_v17 = vadd.f32 %v147_v6, %v97_v23 }
  0xba   :  { %3122 = vst [vmem:[#allocation50_spill] sm:$0xff] %v2422_v16 }
  0xbb   :  { %3123 = vst [vmem:[#allocation51_spill] sm:$0xff] %v2424_v7 }
  0xbd   :  { %v238_v48 = vpop.f32.mrf.mxu2 }
  0xbe   :  { %v2427_v14 = vadd.f32 %v238_v48, %v2406_v20  ;;  %v279_v4 = vpop.f32.mrf.mxu3 }
  0xbf   :  { %v2429_v57 = vadd.f32 %v279_v4, %v100_v21  ;;  %v200_v8 = vpop.f32.mrf.mxu1 }
  0xc0   :  { %3124 = vst [vmem:[#allocation52_spill] sm:$0xff] %v2427_v14  ;;  %v2431_v18 = vadd.f32 %v200_v8, %v98_v11  ;;  %v375_v7 = vpop.f32.mrf.mxu0 }
  0xc1   :  { %3125 = vst [vmem:[#allocation53_spill] sm:$0xff] %v2429_v57  ;;  %v376_v48 = vadd.f32 %v375_v7, %v148_v17 }
  0xc2   :  { %3126 = vst [vmem:[#allocation54_spill] sm:$0xff] %v2431_v18 }
  0xc3   :  { %v1596_v0 = vmul.f32 -1.442695, %v376_v48 }
  0xc5   :  { %v241_v9 = vpop.f32.mrf.mxu2  ;;  %1642 = vpow2.f32 %v1596_v0 }
  0xc6   :  { %v2434_v61 = vadd.f32 %v241_v9, %v2406_v20  ;;  %v282_v13 = vpop.f32.mrf.mxu3 }
  0xc7   :  { %v2436_v22 = vadd.f32 %v282_v13, %v100_v21 }
  0xc8   :  { %3127 = vst [vmem:[#allocation55_spill] sm:$0xff] %v2434_v61  ;;  %v203_v16 = vpop.f32.mrf.mxu1 }
  0xc9   :  { %3128 = vst [vmem:[#allocation56_spill] sm:$0xff] %v2436_v22  ;;  %v2438_v2 = vadd.f32 %v203_v16, %v98_v11 }
  0xcb   :  { %3129 = vst [vmem:[#allocation57_spill] sm:$0xff] %v2438_v2  ;;  %v1643_v7 = vpop.eup %1642 }
  0xcc   :  { %v441_v17 = vadd.f32 1.0, %v1643_v7 }
  0xcd   :  { %v244_v14 = vpop.f32.mrf.mxu2 }
  0xce   :  { %v2441_v4 = vadd.f32 %v244_v14, %v2406_v20  ;;  %v285_v57 = vpop.f32.mrf.mxu3  ;;  %1644 = vrcp.f32 %v441_v17  ;;  %vm447_vm2 = vweird.f32 %v441_v17 }
  0xcf   :  { %v2443_v8 = vadd.f32 %v285_v57, %v100_v21  ;;  %v189_v57 = vadd.f32 %v188_v35, %v98_v11 }
  0xd0   :  { %3130 = vst [vmem:[#allocation58_spill] sm:$0xff] %v2441_v4  ;;  %v206_v18 = vpop.f32.mrf.mxu1 }
  0xd1   :  { %3131 = vst [vmem:[#allocation59_spill] sm:$0xff] %v2443_v8  ;;  %v2445_v9 = vadd.f32 %v206_v18, %v98_v11 }
  0xd3   :  { %3132 = vst [vmem:[#allocation60_spill] sm:$0xff] %v2445_v9 }
  0xd6   :  { %v247_v13 = vpop.f32.mrf.mxu2 }
  0xd7   :  { %v2448_v61 = vadd.f32 %v247_v13, %v2406_v20  ;;  %v288_v16 = vpop.f32.mrf.mxu3 }
  0xd8   :  { %v2450_v2 = vadd.f32 %v288_v16, %v100_v21  ;;  %v209_v23 = vpop.f32.mrf.mxu1  ;;  %v271_v16 = vadd.f32 %v2400_v63, %v100_v21 }
  0xd9   :  { %3133 = vst [vmem:[#allocation61_spill] sm:$0xff] %v2448_v61  ;;  %v2452_v6 = vadd.f32 %v209_v23, %v98_v11  ;;  %v1645_v23 = vpop.eup %1644 }
  0xda   :  { %3134 = vst [vmem:[#allocation62_spill] sm:$0xff] %v2450_v2  ;;  %v443_v8 = vmul.f32 %v1645_v23, %v441_v17  ;;  %vm448_vm1 = vweird.f32 %v1645_v23 }
  0xdb   :  { %3135 = vst [vmem:[#allocation63_spill] sm:$0xff] %v2452_v6  ;;  %vm449_vm4 = vmor %vm447_vm2, %vm448_vm1 }
  0xdc   :  { %v444_v35 = vsub.f32 1.0, %v443_v8  ;;  %v451_v8 = vand.u32 2147483647, %v441_v17 }
  0xde   :  { %v250_v14 = vpop.f32.mrf.mxu2  ;;  %vm452_vm7 = vcmp.eq.f32.partialorder %v451_v8, 8.507059e+37 }
  0xdf   :  { %v2455_v4 = vadd.f32 %v250_v14, %v2406_v20  ;;  %v291_v18 = vpop.f32.mrf.mxu3 }
  0xe0   :  { %v2457_v48 = vadd.f32 %v291_v18, %v100_v21  ;;  %v395_v0 = vpop.f32.mrf.mxu1  ;;  %v230_v18 = vadd.f32 %v2398_v12, %v2406_v20 }
  0xe1   :  { %3136 = vst [vmem:[#allocation64_spill] sm:$0xff] %v2455_v4  ;;  %v396_v9 = vadd.f32 %v395_v0, %v189_v57 }
  0xe2   :  { %3137 = vst [vmem:[#allocation65_spill] sm:$0xff] %v2457_v48 }
  0xe3   :  { %v1597_v13 = vmul.f32 -1.442695, %v396_v9  ;;  %v445_v9 = vmul.f32 %v1645_v23, %v444_v35 }
  0xe5   :  { %1646 = vpow2.f32 %v1597_v13 }
  0xe6   :  { %v415_v14 = vpop.f32.mrf.mxu2 }
  0xe7   :  { %v435_v61 = vpop.f32.mrf.mxu3  ;;  %v416_v0 = vadd.f32 %v415_v14, %v230_v18 }
  0xe8   :  { %v436_v6 = vadd.f32 %v435_v61, %v271_v16  ;;  %v446_v61 = vadd.f32 %v1645_v23, %v445_v9 }
  0xea   :  { %v1598_v2 = vmul.f32 -1.442695, %v436_v6  ;;  %v450_v20 = vsel %vm449_vm4, %v1645_v23, %v446_v61 }
  0xeb   :  { %v1647_v7 = vpop.eup %1646 }
  0xec   :  { %v460_v11 = vadd.f32 1.0, %v1647_v7  ;;  %1648 = vpow2.f32 %v1598_v2  ;;  %v453_v2 = vand.u32 2147483648, %v441_v17 }
  0xee   :  { %1650 = vrcp.f32 %v460_v11  ;;  %v472_v6 = vand.u32 2147483648, %v460_v11  ;;  %v470_v7 = vand.u32 2147483647, %v460_v11  ;;  %vm466_vm5 = vweird.f32 %v460_v11 }
  0xf0   :  { %v473_v18 = vor.u32 1.1754944e-38, %v472_v6  ;;  %vm471_vm8 = vcmp.eq.f32.partialorder %v470_v7, 8.507059e+37 }
  0xf2   :  { %v1649_v57 = vpop.eup %1648 }
  0xf3   :  { %v480_v13 = vadd.f32 1.0, %v1649_v57  ;;  %v454_v57 = vor.u32 1.1754944e-38, %v453_v2 }
  0xf4   :  { %v1651_v4 = vpop.eup %1650 }
  0xf5   :  { %v462_v63 = vmul.f32 %v1651_v4, %v460_v11  ;;  %1652 = vrcp.f32 %v480_v13  ;;  %vm467_vm3 = vweird.f32 %v1651_v4  ;;  %v492_v23 = vand.u32 2147483648, %v480_v13 }
  0xf6   :  { %1654 = vtanh.f32 %v416_v0  ;;  %vm468_vm6 = vmor %vm466_vm5, %vm467_vm3  ;;  %vm486_vm10 = vweird.f32 %v480_v13  ;;  %v490_v11 = vand.u32 2147483647, %v480_v13 }
  0xf7   :  { %v463_v21 = vsub.f32 1.0, %v462_v63  ;;  %v455_v63 = vsel %vm452_vm7, %v454_v57, %v450_v20  ;;  %v493_v6 = vor.u32 1.1754944e-38, %v492_v23  ;;  %v3167_v20 = vld [vmem:[#allocation44_spill] sm:$0xff] }
  0xf8   :  { %vm491_vm12 = vcmp.eq.f32.partialorder %v490_v11, 8.507059e+37 }
  0xf9   :  { %v464_v16 = vmul.f32 %v1651_v4, %v463_v21 }
  0xfb   :  { %v1653_v12 = vpop.eup %1652  ;;  %v465_v35 = vadd.f32 %v1651_v4, %v464_v16 }
  0xfc   :  { %v1655_v14 = vpop.eup %1654  ;;  %v482_v0 = vmul.f32 %v1653_v12, %v480_v13  ;;  %vm487_vm9 = vweird.f32 %v1653_v12 }
  0xfd   :  { %v469_v9 = vsel %vm468_vm6, %v1651_v4, %v465_v35  ;;  %v497_v17 = vmul.f32 %v1655_v14, %v455_v63  ;;  %vm488_vm11 = vmor %vm486_vm10, %vm487_vm9 }
  0xfe   :  { %v474_v48 = vsel %vm471_vm8, %v473_v18, %v469_v9  ;;  %v483_v22 = vsub.f32 1.0, %v482_v0 }
  0xff   :  { %v496_v21 = vmul.f32 0.0, %v474_v48 }
 0x100   :  { %v484_v53 = vmul.f32 %v1653_v12, %v483_v22 }
 0x101   :  { %v2462_v1 = vadd.f32 %v497_v17, %v496_v21 }
 0x102   :  { %v485_v10 = vadd.f32 %v1653_v12, %v484_v53 }
 0x103   :  { %1656 = vtanh.f32 %v2462_v1 }
 0x104   :  { %v489_v61 = vsel %vm488_vm11, %v1653_v12, %v485_v10 }
 0x105   :  { %v494_v2 = vsel %vm491_vm12, %v493_v6, %v489_v61 }
 0x109   :  { %v1657_v4 = vpop.eup %1656 }
 0x10a   :  { %v500_v16 = vmul.f32 %v1657_v4, %v494_v2 }
 0x10c   :  { %517 = vmatmul.f32.vlgmr.msra.gmra.mxu0 %v500_v16  ;;  %537 = vmatmul.f32.vlgmr.msrb.gmra.mxu1 %v500_v16 }
 0x10d   :  { %557 = vmatmul.f32.vlgmr.msrb.gmra.mxu2 %v500_v16  ;;  %577 = vmatmul.f32.vlgmr.msrb.gmra.mxu3 %v500_v16 }
 0x10e   :  { %787 = vmatpush.msra.mxu0 %v3109_v5  ;;  %807 = vmatpush.msrb.mxu1 %v2026_v24  ;;  %v3140_v24 = vld [vmem:[#allocation13_spill] sm:$0xff] }
 0x10f   :  { %827 = vmatpush.msrb.mxu2 %v2037_v28  ;;  %847 = vmatpush.msrb.mxu3 %v2029_v25  ;;  %v3141_v25 = vld [vmem:[#allocation16_spill] sm:$0xff]  ;;  %v3144_v28 = vld [vmem:[#allocation14_spill] sm:$0xff] }
 0x110   :  { %788 = vmatpush.msra.mxu0 %v2016_v15  ;;  %808 = vmatpush.msrb.mxu1 %v2035_v27  ;;  %v3138_v15 = vld [vmem:[#allocation22_spill] sm:$0xff]  ;;  %v3143_v27 = vld [vmem:[#allocation20_spill] sm:$0xff] }
 0x111   :  { %828 = vmatpush.msrb.mxu2 %v2049_v32  ;;  %848 = vmatpush.msrb.mxu3 %v2043_v30  ;;  %v3146_v30 = vld [vmem:[#allocation29_spill] sm:$0xff]  ;;  %v3148_v32 = vld [vmem:[#allocation15_spill] sm:$0xff] }
 0x112   :  { %789 = vmatpush.msra.mxu0 %v2019_v19  ;;  %809 = vmatpush.msrb.mxu1 %v2047_v31  ;;  %v3139_v19 = vld [vmem:[#allocation17_spill] sm:$0xff]  ;;  %v3147_v31 = vld [vmem:[#allocation24_spill] sm:$0xff] }
 0x113   :  { %829 = vmatpush.msrb.mxu2 %v2080_v41  ;;  %849 = vmatpush.msrb.mxu3 %v2054_v34  ;;  %v3150_v34 = vld [vmem:[#allocation32_spill] sm:$0xff]  ;;  %v3156_v41 = vld [vmem:[#allocation21_spill] sm:$0xff] }
 0x114   :  { %790 = vmatpush.msra.mxu0 %v2031_v26  ;;  %810 = vmatpush.msrb.mxu1 %v2062_v36  ;;  %v3142_v26 = vld [vmem:[#allocation26_spill] sm:$0xff]  ;;  %v3151_v36 = vld [vmem:[#allocation28_spill] sm:$0xff] }
 0x115   :  { %830 = vmatpush.msrb.mxu2 %v2092_v45  ;;  %850 = vmatpush.msrb.mxu3 %v2074_v39  ;;  %v3154_v39 = vld [vmem:[#allocation35_spill] sm:$0xff]  ;;  %v3160_v45 = vld [vmem:[#allocation25_spill] sm:$0xff] }
 0x116   :  { %791 = vmatpush.msra.mxu0 %v2041_v29  ;;  %811 = vmatpush.msrb.mxu1 %v2072_v38  ;;  %v3145_v29 = vld [vmem:[#allocation19_spill] sm:$0xff] }
 0x117   :  { %831 = vmatpush.msrb.mxu2 %v2105_v49  ;;  %851 = vmatpush.msrb.mxu3 %v2086_v43  ;;  %v3153_v38 = vld [vmem:[#allocation27_spill] sm:$0xff]  ;;  %v3158_v43 = vld [vmem:[#allocation36_spill] sm:$0xff]  ;;  %v3163_v49 = vld [vmem:[#allocation37_spill] sm:$0xff] }
 0x118   :  { %792 = vmatpush.msra.mxu0 %v2052_v33  ;;  %812 = vmatpush.msrb.mxu1 %v2084_v42  ;;  %v3149_v33 = vld [vmem:[#allocation23_spill] sm:$0xff]  ;;  %v3157_v42 = vld [vmem:[#allocation30_spill] sm:$0xff] }
 0x119   :  { %832 = vmatpush.msrb.mxu2 %v2123_v54  ;;  %852 = vmatpush.msrb.mxu3 %v2098_v47  ;;  %v3162_v47 = vld [vmem:[#allocation38_spill] sm:$0xff]  ;;  %v3165_v54 = vld [vmem:[#allocation43_spill] sm:$0xff] }
 0x11a   :  { %793 = vmatpush.msra.mxu0 %v2067_v37  ;;  %813 = vmatpush.msrb.mxu1 %v2096_v46  ;;  %v3152_v37 = vld [vmem:[#allocation18_spill] sm:$0xff]  ;;  %v3161_v46 = vld [vmem:[#allocation33_spill] sm:$0xff] }
 0x11b   :  { %833 = vmatpush.msrb.mxu2 %v2135_v58  ;;  %853 = vmatpush.msrb.mxu3 %v2116_v52  ;;  %v3164_v52 = vld [vmem:[#allocation41_spill] sm:$0xff] }
 0x11c   :  { %794 = vmatpush.msra.mxu0 %v2078_v40  ;;  %814 = vmatpush.msrb.mxu1 %v2114_v51  ;;  %v3155_v40 = vld [vmem:[#allocation31_spill] sm:$0xff] }
 0x11d   :  { %834 = vmatpush.msrb.mxu2 %v2148_v62  ;;  %854 = vmatpush.msrb.mxu3 %v2129_v56 }
 0x11e   :  { %795 = vmatpush.msra.mxu0 %v2089_v44  ;;  %815 = vmatpush.msrb.mxu1 %v2127_v55  ;;  %v3159_v44 = vld [vmem:[#allocation34_spill] sm:$0xff] }
 0x11f   :  { %835 = vmatpush.msrb.mxu2 %v2166_v3  ;;  %855 = vmatpush.msrb.mxu3 %v2141_v60  ;;  %v3166_v60 = vld [vmem:[#allocation45_spill] sm:$0xff] }
 0x120   :  { %796 = vmatpush.msra.mxu0 %v2109_v50  ;;  %816 = vmatpush.msrb.mxu1 %v2139_v59 }
 0x121   :  { %836 = vmatpush.msrb.mxu2 %v3138_v15  ;;  %856 = vmatpush.msrb.mxu3 %v3139_v19 }
 0x122   :  { %797 = vmatpush.msra.mxu0 %v3140_v24  ;;  %817 = vmatpush.msrb.mxu1 %v3141_v25 }
 0x123   :  { %837 = vmatpush.msrb.mxu2 %v3142_v26  ;;  %857 = vmatpush.msrb.mxu3 %v3143_v27 }
 0x124   :  { %798 = vmatpush.msra.mxu0 %v3144_v28  ;;  %818 = vmatpush.msrb.mxu1 %v3145_v29 }
 0x125   :  { %838 = vmatpush.msrb.mxu2 %v3146_v30  ;;  %858 = vmatpush.msrb.mxu3 %v3147_v31 }
 0x126   :  { %799 = vmatpush.msra.mxu0 %v3148_v32  ;;  %819 = vmatpush.msrb.mxu1 %v3149_v33 }
 0x127   :  { %839 = vmatpush.msrb.mxu2 %v3150_v34  ;;  %859 = vmatpush.msrb.mxu3 %v3151_v36 }
 0x128   :  { %800 = vmatpush.msra.mxu0 %v3152_v37  ;;  %820 = vmatpush.msrb.mxu1 %v3153_v38 }
 0x129   :  { %840 = vmatpush.msrb.mxu2 %v3154_v39  ;;  %860 = vmatpush.msrb.mxu3 %v3155_v40 }
 0x12a   :  { %801 = vmatpush.msra.mxu0 %v3156_v41  ;;  %821 = vmatpush.msrb.mxu1 %v3157_v42 }
 0x12b   :  { %841 = vmatpush.msrb.mxu2 %v3158_v43  ;;  %861 = vmatpush.msrb.mxu3 %v3159_v44 }
 0x12c   :  { %802 = vmatpush.msra.mxu0 %v3160_v45  ;;  %822 = vmatpush.msrb.mxu1 %v3161_v46 }
 0x12d   :  { %842 = vmatpush.msrb.mxu2 %v3162_v47  ;;  %862 = vmatpush.msrb.mxu3 %v3163_v49 }
 0x189   :  { %v518_v50 = vpop.f32.mrf.mxu0  ;;  %v538_v51 = vpop.f32.mrf.mxu1 }
 0x18a   :  { %v519_v53 = vadd.f32 %v518_v50, %v3164_v52  ;;  %v539_v55 = vadd.f32 %v538_v51, %v3165_v54 }
 0x18c   :  { %v1599_v56 = vmul.f32 -1.442695, %v519_v53  ;;  %v1600_v58 = vmul.f32 -1.442695, %v539_v55 }
 0x18e   :  { %1658 = vpow2.f32 %v1599_v56 }
 0x18f   :  { %1660 = vpow2.f32 %v1600_v58 }
 0x190   :  { %v578_v59 = vpop.f32.mrf.mxu3  ;;  %v558_v13 = vpop.f32.mrf.mxu2 }
 0x191   :  { %v579_v62 = vadd.f32 %v578_v59, %v3166_v60  ;;  %v559_v35 = vadd.f32 %v558_v13, %v3167_v20  ;;  %v2540_v59 = vld [vmem:[#allocation5 + $0x1e8] sm:$0xff]  ;;  %v2543_v60 = vld [vmem:[#allocation5 + $0x1f0] sm:$0xff] }
 0x192   :  { %v2564_v13 = vld [vmem:[#allocation5 + $0x1a8] sm:$0xff] }
 0x193   :  { %v1601_v3 = vmul.f32 -1.442695, %v579_v62  ;;  %v2546_v62 = vld [vmem:[#allocation5 + $0x1f8] sm:$0xff]  ;;  %v2576_v20 = vld [vmem:[#allocation5 + $0x188] sm:$0xff] }
 0x194   :  { %v1659_v10 = vpop.eup %1658 }
 0x195   :  { %v1661_v5 = vpop.eup %1660  ;;  %v584_v22 = vadd.f32 1.0, %v1659_v10  ;;  %1662 = vpow2.f32 %v1601_v3  ;;  %v2549_v3 = vld [vmem:[#allocation5 + $0x1c0] sm:$0xff]  ;;  %v2552_v10 = vld [vmem:[#allocation5 + $0x1c8] sm:$0xff] }
 0x196   :  { %v603_v48 = vadd.f32 1.0, %v1661_v5  ;;  %v2555_v5 = vld [vmem:[#allocation5 + $0x1d0] sm:$0xff] }
 0x197   :  { %1664 = vrcp.f32 %v584_v22  ;;  %v596_v63 = vand.u32 2147483648, %v584_v22  ;;  %v594_v23 = vand.u32 2147483647, %v584_v22  ;;  %vm590_vm15 = vweird.f32 %v584_v22 }
 0x198   :  { %1666 = vrcp.f32 %v603_v48  ;;  %v615_v21 = vand.u32 2147483648, %v603_v48  ;;  %v613_v61 = vand.u32 2147483647, %v603_v48  ;;  %vm609_vm0 = vweird.f32 %v603_v48 }
 0x199   :  { %v597_v2 = vor.u32 1.1754944e-38, %v596_v63  ;;  %vm595_vm3 = vcmp.eq.f32.partialorder %v594_v23, 8.507059e+37  ;;  %v2597_v63 = vld [vmem:[#allocation5 + $0x140] sm:$0xff]  ;;  %v2606_v23 = vld [vmem:[#allocation5 + $0x158] sm:$0xff] }
 0x19a   :  { %v616_v24 = vor.u32 1.1754944e-38, %v615_v21  ;;  %vm614_vm4 = vcmp.eq.f32.partialorder %v613_v61, 8.507059e+37  ;;  %v2600_v21 = vld [vmem:[#allocation5 + $0x148] sm:$0xff] }
 0x19b   :  { %v1663_v8 = vpop.eup %1662  ;;  %v2612_v61 = vld [vmem:[#allocation5 + $0x128] sm:$0xff] }
 0x19c   :  { %v623_v7 = vadd.f32 1.0, %v1663_v8  ;;  %v2567_v8 = vld [vmem:[#allocation5 + $0x1b0] sm:$0xff] }
 0x19d   :  { %v1665_v12 = vpop.eup %1664 }
 0x19e   :  { %v1667_v14 = vpop.eup %1666  ;;  %v586_v18 = vmul.f32 %v1665_v12, %v584_v22  ;;  %1668 = vrcp.f32 %v623_v7  ;;  %vm591_vm13 = vweird.f32 %v1665_v12  ;;  %v635_v51 = vand.u32 2147483648, %v623_v7  ;;  %v2558_v22 = vld [vmem:[#allocation5 + $0x1d8] sm:$0xff] }
 0x19f   :  { %v605_v57 = vmul.f32 %v1667_v14, %v603_v48  ;;  %1670 = vtanh.f32 %v559_v35  ;;  %vm610_vm14 = vweird.f32 %v1667_v14  ;;  %vm592_vm1 = vmor %vm590_vm15, %vm591_vm13  ;;  %vm629_vm6 = vweird.f32 %v623_v7  ;;  %v2561_v48 = vld [vmem:[#allocation5 + $0x1a0] sm:$0xff]  ;;  %v2579_v35 = vld [vmem:[#allocation5 + $0x190] sm:$0xff] }
 0x1a0   :  { %v587_v0 = vsub.f32 1.0, %v586_v18  ;;  %vm611_vm2 = vmor %vm609_vm0, %vm610_vm14  ;;  %v633_v52 = vand.u32 2147483647, %v623_v7  ;;  %v636_v54 = vor.u32 1.1754944e-38, %v635_v51  ;;  %v2585_v18 = vld [vmem:[#allocation5 + $0x160] sm:$0xff] }
 0x1a1   :  { %v606_v9 = vsub.f32 1.0, %v605_v57  ;;  %v2588_v57 = vld [vmem:[#allocation5 + $0x168] sm:$0xff]  ;;  %v2665_v51 = vld [vmem:[#allocation5 + $0x80] sm:$0xff] }
 0x1a2   :  { %v588_v17 = vmul.f32 %v1665_v12, %v587_v0  ;;  %vm634_vm8 = vcmp.eq.f32.partialorder %v633_v52, 8.507059e+37  ;;  %v2591_v0 = vld [vmem:[#allocation5 + $0x170] sm:$0xff]  ;;  %3172 = vst [vmem:[#allocation26_spill] sm:$0xff] %v2665_v51  ;;  %v2672_v52 = vld [vmem:[#allocation5 + $0x98] sm:$0xff] }
 0x1a3   :  { %v607_v11 = vmul.f32 %v1667_v14, %v606_v9  ;;  %v2594_v9 = vld [vmem:[#allocation5 + $0x178] sm:$0xff]  ;;  %3174 = vst [vmem:[#allocation14_spill] sm:$0xff] %v2672_v52 }
 0x1a4   :  { %v1669_v6 = vpop.eup %1668  ;;  %v589_v4 = vadd.f32 %v1665_v12, %v588_v17  ;;  %v2603_v17 = vld [vmem:[#allocation5 + $0x150] sm:$0xff] }
 0x1a5   :  { %v608_v16 = vadd.f32 %v1667_v14, %v607_v11  ;;  %v625_v19 = vmul.f32 %v1669_v6, %v623_v7  ;;  %v1671_v27 = vpop.eup %1670  ;;  %vm630_vm5 = vweird.f32 %v1669_v6  ;;  %v2570_v7 = vld [vmem:[#allocation5 + $0x1b8] sm:$0xff]  ;;  %v2609_v11 = vld [vmem:[#allocation5 + $0x120] sm:$0xff] }
 0x1a6   :  { %v593_v25 = vsel %vm592_vm1, %v1665_v12, %v589_v4  ;;  %vm631_vm7 = vmor %vm629_vm6, %vm630_vm5  ;;  %v2573_v12 = vld [vmem:[#allocation5 + $0x180] sm:$0xff]  ;;  %v2618_v4 = vld [vmem:[#allocation5 + $0x138] sm:$0xff] }
 0x1a7   :  { %v598_v28 = vsel %vm595_vm3, %v597_v2, %v593_v25  ;;  %v612_v29 = vsel %vm611_vm2, %v1667_v14, %v608_v16  ;;  %v626_v31 = vsub.f32 1.0, %v625_v19  ;;  %v2582_v14 = vld [vmem:[#allocation5 + $0x198] sm:$0xff]  ;;  %v2621_v2 = vld [vmem:[#allocation5 + $0x100] sm:$0xff]  ;;  %v2624_v16 = vld [vmem:[#allocation5 + $0x108] sm:$0xff] }
 0x1a8   :  { %v617_v32 = vsel %vm614_vm4, %v616_v24, %v612_v29  ;;  %v640_v33 = vmul.f32 %v1671_v27, %v598_v28  ;;  %v2627_v19 = vld [vmem:[#allocation5 + $0x110] sm:$0xff]  ;;  %v2630_v24 = vld [vmem:[#allocation5 + $0x118] sm:$0xff]  ;;  %v2633_v25 = vld [vmem:[#allocation5 + $0xe0] sm:$0xff] }
 0x1a9   :  { %v639_v37 = vmul.f32 %v617_v32, %v2462_v1  ;;  %v627_v41 = vmul.f32 %v1669_v6, %v626_v31  ;;  %v2537_v1 = vld [vmem:[#allocation5 + $0x1e0] sm:$0xff]  ;;  %v2636_v27 = vld [vmem:[#allocation5 + $0xe8] sm:$0xff]  ;;  %v2639_v28 = vld [vmem:[#allocation5 + $0xf0] sm:$0xff] }
 0x1aa   :  { %v2642_v29 = vld [vmem:[#allocation5 + $0xf8] sm:$0xff]  ;;  %v2645_v31 = vld [vmem:[#allocation5 + $0xc0] sm:$0xff]  ;;  %v2648_v32 = vld [vmem:[#allocation5 + $0xc8] sm:$0xff] }
 0x1ab   :  { %v2534_v45 = vadd.f32 %v640_v33, %v639_v37  ;;  %v628_v50 = vadd.f32 %v1669_v6, %v627_v41  ;;  %v2652_v33 = vld [vmem:[#allocation5 + $0xd8] sm:$0xff]  ;;  %v2655_v37 = vld [vmem:[#allocation5 + $0xa0] sm:$0xff]  ;;  %v2658_v41 = vld [vmem:[#allocation5 + $0xa8] sm:$0xff] }
 0x1ac   :  { %3168 = vst [vmem:[#allocation22_spill] sm:$0xff] %v2652_v33 }
 0x1ad   :  { %1672 = vtanh.f32 %v2534_v45  ;;  %v632_v53 = vsel %vm631_vm7, %v1669_v6, %v628_v50  ;;  %v2615_v6 = vld [vmem:[#allocation5 + $0x130] sm:$0xff]  ;;  %3169 = vst [vmem:[#allocation17_spill] sm:$0xff] %v2655_v37  ;;  %v2662_v50 = vld [vmem:[#allocation5 + $0xb8] sm:$0xff] }
 0x1ae   :  { %v637_v56 = vsel %vm634_vm8, %v636_v54, %v632_v53  ;;  %3170 = vst [vmem:[#allocation13_spill] sm:$0xff] %v2658_v41  ;;  %v2675_v53 = vld [vmem:[#allocation5 + $0x60] sm:$0xff] }
 0x1af   :  { %3171 = vst [vmem:[#allocation16_spill] sm:$0xff] %v2662_v50  ;;  %v2683_v54 = vld [vmem:[#allocation5 + $0x40] sm:$0xff] }
 0x1b0   :  { %3175 = vst [vmem:[#allocation19_spill] sm:$0xff] %v2675_v53 }
 0x1b1   :  { %3177 = vst [vmem:[#allocation24_spill] sm:$0xff] %v2683_v54 }
 0x1b3   :  { %v1673_v55 = vpop.eup %1672 }
 0x1b4   :  { %v643_v58 = vmul.f32 %v1673_v55, %v637_v56  ;;  %v3181_v55 = vld [vmem:[#allocation47_spill] sm:$0xff] }
 0x1b6   :  { %660 = vmatmul.f32.vlgmr.msrb.gmra.mxu0 %v643_v58  ;;  %680 = vmatmul.f32.vlgmr.msra.gmra.mxu1 %v643_v58 }
 0x1b7   :  { %700 = vmatmul.f32.vlgmr.msra.gmra.mxu2 %v643_v58  ;;  %720 = vmatmul.f32.vlgmr.msra.gmra.mxu3 %v643_v58  ;;  %v3182_v58 = vld [vmem:[#allocation49_spill] sm:$0xff] }
 0x1b8   :  { %930 = vmatpush.msrb.mxu0 %v2537_v1  ;;  %950 = vmatpush.msra.mxu1 %v2540_v59 }
 0x1b9   :  { %970 = vmatpush.msra.mxu2 %v2543_v60  ;;  %990 = vmatpush.msra.mxu3 %v2546_v62 }
 0x1ba   :  { %931 = vmatpush.msrb.mxu0 %v2549_v3  ;;  %951 = vmatpush.msra.mxu1 %v2552_v10 }
 0x1bb   :  { %971 = vmatpush.msra.mxu2 %v2555_v5  ;;  %991 = vmatpush.msra.mxu3 %v2558_v22 }
 0x1bc   :  { %932 = vmatpush.msrb.mxu0 %v2561_v48  ;;  %952 = vmatpush.msra.mxu1 %v2564_v13 }
 0x1bd   :  { %972 = vmatpush.msra.mxu2 %v2567_v8  ;;  %992 = vmatpush.msra.mxu3 %v2570_v7 }
 0x1be   :  { %933 = vmatpush.msrb.mxu0 %v2573_v12  ;;  %953 = vmatpush.msra.mxu1 %v2576_v20 }
 0x1bf   :  { %973 = vmatpush.msra.mxu2 %v2579_v35  ;;  %993 = vmatpush.msra.mxu3 %v2582_v14 }
 0x1c0   :  { %934 = vmatpush.msrb.mxu0 %v2585_v18  ;;  %954 = vmatpush.msra.mxu1 %v2588_v57 }
 0x1c1   :  { %974 = vmatpush.msra.mxu2 %v2591_v0  ;;  %994 = vmatpush.msra.mxu3 %v2594_v9 }
 0x1c2   :  { %935 = vmatpush.msrb.mxu0 %v2597_v63  ;;  %955 = vmatpush.msra.mxu1 %v2600_v21 }
 0x1c3   :  { %975 = vmatpush.msra.mxu2 %v2603_v17  ;;  %995 = vmatpush.msra.mxu3 %v2606_v23 }
 0x1c4   :  { %936 = vmatpush.msrb.mxu0 %v2609_v11  ;;  %956 = vmatpush.msra.mxu1 %v2612_v61 }
 0x1c5   :  { %976 = vmatpush.msra.mxu2 %v2615_v6  ;;  %996 = vmatpush.msra.mxu3 %v2618_v4 }
 0x1c6   :  { %937 = vmatpush.msrb.mxu0 %v2621_v2  ;;  %957 = vmatpush.msra.mxu1 %v2624_v16 }
 0x1c7   :  { %977 = vmatpush.msra.mxu2 %v2627_v19  ;;  %997 = vmatpush.msra.mxu3 %v2630_v24 }
 0x1c8   :  { %938 = vmatpush.msrb.mxu0 %v2633_v25  ;;  %958 = vmatpush.msra.mxu1 %v2636_v27 }
 0x1c9   :  { %978 = vmatpush.msra.mxu2 %v2639_v28  ;;  %998 = vmatpush.msra.mxu3 %v2642_v29 }
 0x1ca   :  { %939 = vmatpush.msrb.mxu0 %v2645_v31  ;;  %959 = vmatpush.msra.mxu1 %v2648_v32 }
 0x1cb   :  { %979 = vmatpush.msra.mxu2 %v3138_v15  ;;  %999 = vmatpush.msra.mxu3 %v2652_v33  ;;  %v2668_v15 = vld [vmem:[#allocation5 + $0x88] sm:$0xff] }
 0x1cc   :  { %940 = vmatpush.msrb.mxu0 %v2655_v37  ;;  %960 = vmatpush.msra.mxu1 %v2658_v41  ;;  %3173 = vst [vmem:[#allocation20_spill] sm:$0xff] %v2668_v15 }
 0x1cd   :  { %980 = vmatpush.msra.mxu2 %v3142_v26  ;;  %1000 = vmatpush.msra.mxu3 %v2662_v50  ;;  %v2678_v26 = vld [vmem:[#allocation5 + $0x68] sm:$0xff] }
 0x1ce   :  { %941 = vmatpush.msrb.mxu0 %v2665_v51  ;;  %961 = vmatpush.msra.mxu1 %v2668_v15  ;;  %3176 = vst [vmem:[#allocation29_spill] sm:$0xff] %v2678_v26 }
 0x1cf   :  { %981 = vmatpush.msra.mxu2 %v3146_v30  ;;  %1001 = vmatpush.msra.mxu3 %v2672_v52  ;;  %v2689_v30 = vld [vmem:[#allocation5 + $0x20] sm:$0xff] }
 0x1d0   :  { %942 = vmatpush.msrb.mxu0 %v2675_v53  ;;  %962 = vmatpush.msra.mxu1 %v2678_v26  ;;  %3178 = vst [vmem:[#allocation15_spill] sm:$0xff] %v2689_v30 }
 0x1d1   :  { %982 = vmatpush.msra.mxu2 %v3150_v34  ;;  %1002 = vmatpush.msra.mxu3 %v3151_v36  ;;  %v2695_v34 = vld [vmem:[#allocation5] sm:$0xff] }
 0x1d2   :  { %943 = vmatpush.msrb.mxu0 %v2683_v54  ;;  %963 = vmatpush.msra.mxu1 %v3153_v38  ;;  %3179 = vst [vmem:[#allocation23_spill] sm:$0xff] %v2695_v34 }
 0x1d3   :  { %983 = vmatpush.msra.mxu2 %v3154_v39  ;;  %1003 = vmatpush.msra.mxu3 %v3155_v40  ;;  %v3180_v39 = vld [vmem:[#allocation42_spill] sm:$0xff] }
 0x1d4   :  { %944 = vmatpush.msrb.mxu0 %v2689_v30  ;;  %964 = vmatpush.msra.mxu1 %v3157_v42 }
 0x1d5   :  { %984 = vmatpush.msra.mxu2 %v3158_v43  ;;  %1004 = vmatpush.msra.mxu3 %v3159_v44 }
 0x1d6   :  { %945 = vmatpush.msrb.mxu0 %v2695_v34  ;;  %965 = vmatpush.msra.mxu1 %v3161_v46 }
 0x1d7   :  { %985 = vmatpush.msra.mxu2 %v3162_v47  ;;  %1005 = vmatpush.msra.mxu3 %v3163_v49 }
 0x233   :  { %v661_v36 = vpop.f32.mrf.mxu0  ;;  %v681_v38 = vpop.f32.mrf.mxu1 }
 0x234   :  { %v662_v40 = vadd.f32 %v661_v36, %v3180_v39  ;;  %v682_v42 = vadd.f32 %v681_v38, %v3181_v55  ;;  %v3183_v38 = vld [vmem:[#allocation48_spill] sm:$0xff] }
 0x236   :  { %v1602_v56 = vmul.f32 -1.442695, %v662_v40  ;;  %v1603_v43 = vmul.f32 -1.442695, %v682_v42 }
 0x238   :  { %1674 = vpow2.f32 %v1602_v56 }
 0x239   :  { %1676 = vpow2.f32 %v1603_v43 }
 0x23a   :  { %v721_v44 = vpop.f32.mrf.mxu3  ;;  %v701_v49 = vpop.f32.mrf.mxu2 }
 0x23b   :  { %v722_v30 = vadd.f32 %v721_v44, %v3182_v58  ;;  %v702_v40 = vadd.f32 %v701_v49, %v3183_v38 }
 0x23d   :  { %v1604_v34 = vmul.f32 -1.442695, %v722_v30 }
 0x23e   :  { %v1675_v54 = vpop.eup %1674 }
 0x23f   :  { %v1677_v46 = vpop.eup %1676  ;;  %v727_v26 = vadd.f32 1.0, %v1675_v54  ;;  %1678 = vpow2.f32 %v1604_v34 }
 0x240   :  { %v746_v47 = vadd.f32 1.0, %v1677_v46 }
 0x241   :  { %1680 = vrcp.f32 %v727_v26  ;;  %v739_v30 = vand.u32 2147483648, %v727_v26  ;;  %v737_v34 = vand.u32 2147483647, %v727_v26  ;;  %vm733_vm11 = vweird.f32 %v727_v26 }
 0x242   :  { %1682 = vrcp.f32 %v746_v47  ;;  %v758_v58 = vand.u32 2147483648, %v746_v47  ;;  %v756_v52 = vand.u32 2147483647, %v746_v47  ;;  %vm752_vm12 = vweird.f32 %v746_v47 }
 0x243   :  { %v740_v49 = vor.u32 1.1754944e-38, %v739_v30  ;;  %vm738_vm15 = vcmp.eq.f32.partialorder %v737_v34, 8.507059e+37 }
 0x244   :  { %vm757_vm0 = vcmp.eq.f32.partialorder %v756_v52, 8.507059e+37 }
 0x245   :  { %v1679_v53 = vpop.eup %1678 }
 0x246   :  { %v766_v36 = vadd.f32 1.0, %v1679_v53 }
 0x247   :  { %v1681_v39 = vpop.eup %1680 }
 0x248   :  { %v1683_v55 = vpop.eup %1682  ;;  %v729_v42 = vmul.f32 %v1681_v39, %v727_v26  ;;  %1684 = vrcp.f32 %v766_v36  ;;  %vm734_vm9 = vweird.f32 %v1681_v39  ;;  %v778_v30 = vand.u32 2147483648, %v766_v36 }
 0x249   :  { %v748_v56 = vmul.f32 %v1683_v55, %v746_v47  ;;  %1686 = vtanh.f32 %v702_v40  ;;  %vm753_vm10 = vweird.f32 %v1683_v55  ;;  %vm735_vm13 = vmor %vm733_vm11, %vm734_vm9  ;;  %vm772_vm2 = vweird.f32 %v766_v36 }
 0x24a   :  { %v730_v43 = vsub.f32 1.0, %v729_v42  ;;  %vm754_vm14 = vmor %vm752_vm12, %vm753_vm10  ;;  %v759_v42 = vor.u32 1.1754944e-38, %v758_v58  ;;  %v779_v34 = vor.u32 1.1754944e-38, %v778_v30  ;;  %v3202_v30 = vld [vmem:[#allocation15_spill] sm:$0xff] }
 0x24b   :  { %v749_v44 = vsub.f32 1.0, %v748_v56 }
 0x24c   :  { %v731_v54 = vmul.f32 %v1681_v39, %v730_v43 }
 0x24d   :  { %v750_v46 = vmul.f32 %v1683_v55, %v749_v44 }
 0x24e   :  { %v1685_v15 = vpop.eup %1684  ;;  %v732_v53 = vadd.f32 %v1681_v39, %v731_v54 }
 0x24f   :  { %v751_v38 = vadd.f32 %v1683_v55, %v750_v46  ;;  %v768_v51 = vmul.f32 %v1685_v15, %v766_v36  ;;  %v1687_v40 = vpop.eup %1686  ;;  %vm773_vm1 = vweird.f32 %v1685_v15  ;;  %v3191_v46 = vld [vmem:[#allocation20_spill] sm:$0xff] }
 0x250   :  { %v736_v56 = vsel %vm735_vm13, %v1681_v39, %v732_v53  ;;  %v776_v39 = vand.u32 2147483647, %v766_v36  ;;  %vm774_vm3 = vmor %vm772_vm2, %vm773_vm1  ;;  %v3190_v36 = vld [vmem:[#allocation26_spill] sm:$0xff]  ;;  %v2759_v53 = vld [vmem:[#allocation5 + $0x90] sm:$0xff] }
 0x251   :  { %v741_v50 = vsel %vm738_vm15, %v740_v49, %v736_v56  ;;  %v755_v43 = vsel %vm754_vm14, %v1683_v55, %v751_v38  ;;  %v769_v41 = vsub.f32 1.0, %v768_v51  ;;  %3192 = vst [vmem:[#allocation18_spill] sm:$0xff] %v2759_v53  ;;  %v3193_v49 = vld [vmem:[#allocation14_spill] sm:$0xff]  ;;  %v3194_v38 = vld [vmem:[#allocation19_spill] sm:$0xff]  ;;  %v2765_v56 = vld [vmem:[#allocation5 + $0x70] sm:$0xff] }
 0x252   :  { %v760_v44 = vsel %vm757_vm0, %v759_v42, %v755_v43  ;;  %v783_v37 = vmul.f32 %v1687_v40, %v741_v50  ;;  %vm777_vm4 = vcmp.eq.f32.partialorder %v776_v39, 8.507059e+37  ;;  %v2753_v50 = vld [vmem:[#allocation5 + $0xb0] sm:$0xff]  ;;  %3196 = vst [vmem:[#allocation27_spill] sm:$0xff] %v2765_v56  ;;  %v2768_v40 = vld [vmem:[#allocation5 + $0x78] sm:$0xff]  ;;  %v3198_v43 = vld [vmem:[#allocation24_spill] sm:$0xff] }
 0x253   :  { %v782_v33 = vmul.f32 %v760_v44, %v2534_v45  ;;  %v770_v54 = vmul.f32 %v1685_v15, %v769_v41  ;;  %v2747_v45 = vld [vmem:[#allocation5 + $0xd0] sm:$0xff]  ;;  %3188 = vst [vmem:[#allocation28_spill] sm:$0xff] %v2753_v50  ;;  %v2772_v44 = vld [vmem:[#allocation5 + $0x48] sm:$0xff] }
 0x254   :  { %3184 = vst [vmem:[#allocation32_spill] sm:$0xff] %v2747_v45  ;;  %v3187_v41 = vld [vmem:[#allocation13_spill] sm:$0xff]  ;;  %v2782_v39 = vld [vmem:[#allocation5 + $0x28] sm:$0xff] }
 0x255   :  { %v2706_v26 = vadd.f32 %v783_v37, %v782_v33  ;;  %v771_v47 = vadd.f32 %v1685_v15, %v770_v54  ;;  %v3185_v33 = vld [vmem:[#allocation22_spill] sm:$0xff]  ;;  %v3186_v37 = vld [vmem:[#allocation17_spill] sm:$0xff]  ;;  %3197 = vst [vmem:[#allocation35_spill] sm:$0xff] %v2768_v40 }
 0x256   :  { %v3195_v42 = vld [vmem:[#allocation29_spill] sm:$0xff]  ;;  %3199 = vst [vmem:[#allocation31_spill] sm:$0xff] %v2772_v44 }
 0x257   :  { %1688 = vtanh.f32 %v2706_v26  ;;  %v775_v58 = vsel %vm774_vm3, %v1685_v15, %v771_v47  ;;  %v3189_v15 = vld [vmem:[#allocation16_spill] sm:$0xff]  ;;  %v2775_v54 = vld [vmem:[#allocation5 + $0x50] sm:$0xff]  ;;  %v2778_v47 = vld [vmem:[#allocation5 + $0x58] sm:$0xff]  ;;  %3203 = vst [vmem:[#allocation36_spill] sm:$0xff] %v2782_v39 }
 0x258   :  { %v780_v51 = vsel %vm777_vm4, %v779_v34, %v775_v58  ;;  %3200 = vst [vmem:[#allocation21_spill] sm:$0xff] %v2775_v54  ;;  %v2785_v58 = vld [vmem:[#allocation5 + $0x30] sm:$0xff]  ;;  %v2788_v34 = vld [vmem:[#allocation5 + $0x38] sm:$0xff] }
 0x259   :  { %3201 = vst [vmem:[#allocation30_spill] sm:$0xff] %v2778_v47 }
 0x25a   :  { %3204 = vst [vmem:[#allocation34_spill] sm:$0xff] %v2785_v58 }
 0x25b   :  { %3205 = vst [vmem:[#allocation25_spill] sm:$0xff] %v2788_v34 }
 0x25d   :  { %v1689_v52 = vpop.eup %1688 }
 0x25e   :  { %v786_v55 = vmul.f32 %v1689_v52, %v780_v51  ;;  %v3206_v52 = vld [vmem:[#allocation23_spill] sm:$0xff]  ;;  %v2792_v51 = vld [vmem:[#allocation5 + $0x8] sm:$0xff] }
 0x25f   :  { %3207 = vst [vmem:[#allocation33_spill] sm:$0xff] %v2792_v51 }
 0x260   :  { %803 = vmatmul.f32.vlgmr.msra.gmra.mxu0 %v786_v55  ;;  %823 = vmatmul.f32.vlgmr.msrb.gmra.mxu1 %v786_v55 }
 0x261   :  { %843 = vmatmul.f32.vlgmr.msrb.gmra.mxu2 %v786_v55  ;;  %863 = vmatmul.f32.vlgmr.msrb.gmra.mxu3 %v786_v55  ;;  %v2795_v55 = vld [vmem:[#allocation5 + $0x10] sm:$0xff] }
 0x262   :  { %1073 = vmatpush.msra.mxu0 %v2537_v1  ;;  %1093 = vmatpush.msrb.mxu1 %v2540_v59  ;;  %3208 = vst [vmem:[#allocation38_spill] sm:$0xff] %v2795_v55 }
 0x263   :  { %1113 = vmatpush.msrb.mxu2 %v2543_v60  ;;  %1133 = vmatpush.msrb.mxu3 %v2546_v62 }
 0x264   :  { %1074 = vmatpush.msra.mxu0 %v2549_v3  ;;  %1094 = vmatpush.msrb.mxu1 %v2552_v10 }
 0x265   :  { %1114 = vmatpush.msrb.mxu2 %v2555_v5  ;;  %1134 = vmatpush.msrb.mxu3 %v2558_v22 }
 0x266   :  { %1075 = vmatpush.msra.mxu0 %v2561_v48  ;;  %1095 = vmatpush.msrb.mxu1 %v2564_v13 }
 0x267   :  { %1115 = vmatpush.msrb.mxu2 %v2567_v8  ;;  %1135 = vmatpush.msrb.mxu3 %v2570_v7 }
 0x268   :  { %1076 = vmatpush.msra.mxu0 %v2573_v12  ;;  %1096 = vmatpush.msrb.mxu1 %v2576_v20 }
 0x269   :  { %1116 = vmatpush.msrb.mxu2 %v2579_v35  ;;  %1136 = vmatpush.msrb.mxu3 %v2582_v14 }
 0x26a   :  { %1077 = vmatpush.msra.mxu0 %v2585_v18  ;;  %1097 = vmatpush.msrb.mxu1 %v2588_v57 }
 0x26b   :  { %1117 = vmatpush.msrb.mxu2 %v2591_v0  ;;  %1137 = vmatpush.msrb.mxu3 %v2594_v9 }
 0x26c   :  { %1078 = vmatpush.msra.mxu0 %v2597_v63  ;;  %1098 = vmatpush.msrb.mxu1 %v2600_v21 }
 0x26d   :  { %1118 = vmatpush.msrb.mxu2 %v2603_v17  ;;  %1138 = vmatpush.msrb.mxu3 %v2606_v23 }
 0x26e   :  { %1079 = vmatpush.msra.mxu0 %v2609_v11  ;;  %1099 = vmatpush.msrb.mxu1 %v2612_v61 }
 0x26f   :  { %1119 = vmatpush.msrb.mxu2 %v2615_v6  ;;  %1139 = vmatpush.msrb.mxu3 %v2618_v4 }
 0x270   :  { %1080 = vmatpush.msra.mxu0 %v2621_v2  ;;  %1100 = vmatpush.msrb.mxu1 %v2624_v16 }
 0x271   :  { %1120 = vmatpush.msrb.mxu2 %v2627_v19  ;;  %1140 = vmatpush.msrb.mxu3 %v2630_v24 }
 0x272   :  { %1081 = vmatpush.msra.mxu0 %v2633_v25  ;;  %1101 = vmatpush.msrb.mxu1 %v2636_v27 }
 0x273   :  { %1121 = vmatpush.msrb.mxu2 %v2639_v28  ;;  %1141 = vmatpush.msrb.mxu3 %v2642_v29 }
 0x274   :  { %1082 = vmatpush.msra.mxu0 %v2645_v31  ;;  %1102 = vmatpush.msrb.mxu1 %v2648_v32 }
 0x275   :  { %1122 = vmatpush.msrb.mxu2 %v2747_v45  ;;  %1142 = vmatpush.msrb.mxu3 %v3185_v33 }
 0x276   :  { %1083 = vmatpush.msra.mxu0 %v3186_v37  ;;  %1103 = vmatpush.msrb.mxu1 %v3187_v41 }
 0x277   :  { %1123 = vmatpush.msrb.mxu2 %v2753_v50  ;;  %1143 = vmatpush.msrb.mxu3 %v3189_v15 }
 0x278   :  { %1084 = vmatpush.msra.mxu0 %v3190_v36  ;;  %1104 = vmatpush.msrb.mxu1 %v3191_v46 }
 0x279   :  { %1124 = vmatpush.msrb.mxu2 %v2759_v53  ;;  %1144 = vmatpush.msrb.mxu3 %v3193_v49 }
 0x27a   :  { %1085 = vmatpush.msra.mxu0 %v3194_v38  ;;  %1105 = vmatpush.msrb.mxu1 %v3195_v42 }
 0x27b   :  { %1125 = vmatpush.msrb.mxu2 %v2765_v56  ;;  %1145 = vmatpush.msrb.mxu3 %v2768_v40 }
 0x27c   :  { %1086 = vmatpush.msra.mxu0 %v3198_v43  ;;  %1106 = vmatpush.msrb.mxu1 %v2772_v44  ;;  %v3211_v44 = vld [vmem:[#allocation51_spill] sm:$0xff] }
 0x27d   :  { %1126 = vmatpush.msrb.mxu2 %v2775_v54  ;;  %1146 = vmatpush.msrb.mxu3 %v2778_v47  ;;  %v3210_v47 = vld [vmem:[#allocation46_spill] sm:$0xff] }
 0x27e   :  { %1087 = vmatpush.msra.mxu0 %v3202_v30  ;;  %1107 = vmatpush.msrb.mxu1 %v2782_v39  ;;  %v2798_v30 = vld [vmem:[#allocation5 + $0x18] sm:$0xff] }
 0x27f   :  { %1127 = vmatpush.msrb.mxu2 %v2785_v58  ;;  %1147 = vmatpush.msrb.mxu3 %v2788_v34  ;;  %3209 = vst [vmem:[#allocation37_spill] sm:$0xff] %v2798_v30 }
 0x280   :  { %1088 = vmatpush.msra.mxu0 %v3206_v52  ;;  %1108 = vmatpush.msrb.mxu1 %v2792_v51  ;;  %v3212_v51 = vld [vmem:[#allocation53_spill] sm:$0xff] }
 0x281   :  { %1128 = vmatpush.msrb.mxu2 %v2795_v55  ;;  %1148 = vmatpush.msrb.mxu3 %v2798_v30 }
 0x2dd   :  { %v804_v39 = vpop.f32.mrf.mxu0  ;;  %v824_v58 = vpop.f32.mrf.mxu1 }
 0x2de   :  { %v805_v54 = vadd.f32 %v804_v39, %v3210_v47  ;;  %v825_v34 = vadd.f32 %v824_v58, %v3211_v44  ;;  %v3213_v44 = vld [vmem:[#allocation52_spill] sm:$0xff] }
 0x2e0   :  { %v1605_v43 = vmul.f32 -1.442695, %v805_v54  ;;  %v1606_v52 = vmul.f32 -1.442695, %v825_v34 }
 0x2e2   :  { %1690 = vpow2.f32 %v1605_v43 }
 0x2e3   :  { %1692 = vpow2.f32 %v1606_v52 }
 0x2e4   :  { %v864_v40 = vpop.f32.mrf.mxu3  ;;  %v844_v30 = vpop.f32.mrf.mxu2 }
 0x2e5   :  { %v865_v56 = vadd.f32 %v864_v40, %v3212_v51  ;;  %v845_v54 = vadd.f32 %v844_v30, %v3213_v44 }
 0x2e7   :  { %v1607_v42 = vmul.f32 -1.442695, %v865_v56 }
 0x2e8   :  { %v1691_v38 = vpop.eup %1690 }
 0x2e9   :  { %v1693_v55 = vpop.eup %1692  ;;  %v870_v49 = vadd.f32 1.0, %v1691_v38  ;;  %1694 = vpow2.f32 %v1607_v42 }
 0x2ea   :  { %v889_v53 = vadd.f32 1.0, %v1693_v55 }
 0x2eb   :  { %1696 = vrcp.f32 %v870_v49  ;;  %v882_v56 = vand.u32 2147483648, %v870_v49  ;;  %v880_v42 = vand.u32 2147483647, %v870_v49  ;;  %vm876_vm7 = vweird.f32 %v870_v49 }
 0x2ec   :  { %1698 = vrcp.f32 %v889_v53  ;;  %v901_v51 = vand.u32 2147483648, %v889_v53  ;;  %v899_v36 = vand.u32 2147483647, %v889_v53  ;;  %vm895_vm8 = vweird.f32 %v889_v53 }
 0x2ed   :  { %v883_v30 = vor.u32 1.1754944e-38, %v882_v56  ;;  %vm881_vm11 = vcmp.eq.f32.partialorder %v880_v42, 8.507059e+37 }
 0x2ee   :  { %vm900_vm12 = vcmp.eq.f32.partialorder %v899_v36, 8.507059e+37 }
 0x2ef   :  { %v1695_v46 = vpop.eup %1694 }
 0x2f0   :  { %v909_v47 = vadd.f32 1.0, %v1695_v46 }
 0x2f1   :  { %v1697_v39 = vpop.eup %1696 }
 0x2f2   :  { %v1699_v58 = vpop.eup %1698  ;;  %v872_v43 = vmul.f32 %v1697_v39, %v870_v49  ;;  %1700 = vrcp.f32 %v909_v47  ;;  %vm877_vm5 = vweird.f32 %v1697_v39  ;;  %v921_v56 = vand.u32 2147483648, %v909_v47 }
 0x2f3   :  { %v891_v34 = vmul.f32 %v1699_v58, %v889_v53  ;;  %1702 = vtanh.f32 %v845_v54  ;;  %vm896_vm6 = vweird.f32 %v1699_v58  ;;  %vm878_vm9 = vmor %vm876_vm7, %vm877_vm5  ;;  %vm915_vm14 = vweird.f32 %v909_v47 }
 0x2f4   :  { %v873_v52 = vsub.f32 1.0, %v872_v43  ;;  %vm897_vm10 = vmor %vm895_vm8, %vm896_vm6  ;;  %v902_v43 = vor.u32 1.1754944e-38, %v901_v51  ;;  %v922_v42 = vor.u32 1.1754944e-38, %v921_v56  ;;  %v3232_v56 = vld [vmem:[#allocation15_spill] sm:$0xff] }
 0x2f5   :  { %v892_v40 = vsub.f32 1.0, %v891_v34 }
 0x2f6   :  { %v874_v38 = vmul.f32 %v1697_v39, %v873_v52 }
 0x2f7   :  { %v893_v55 = vmul.f32 %v1699_v58, %v892_v40 }
 0x2f8   :  { %v1701_v15 = vpop.eup %1700  ;;  %v875_v46 = vadd.f32 %v1697_v39, %v874_v38 }
 0x2f9   :  { %v894_v44 = vadd.f32 %v1699_v58, %v893_v55  ;;  %v911_v50 = vmul.f32 %v1701_v15, %v909_v47  ;;  %v1703_v54 = vpop.eup %1702  ;;  %vm916_vm13 = vweird.f32 %v1701_v15  ;;  %v3221_v55 = vld [vmem:[#allocation20_spill] sm:$0xff] }
 0x2fa   :  { %v879_v34 = vsel %vm878_vm9, %v1697_v39, %v875_v46  ;;  %v919_v39 = vand.u32 2147483647, %v909_v47  ;;  %vm917_vm15 = vmor %vm915_vm14, %vm916_vm13  ;;  %v3220_v47 = vld [vmem:[#allocation26_spill] sm:$0xff] }
 0x2fb   :  { %v884_v41 = vsel %vm881_vm11, %v883_v30, %v879_v34  ;;  %v898_v52 = vsel %vm897_vm10, %v1699_v58, %v894_v44  ;;  %v912_v37 = vsub.f32 1.0, %v911_v50  ;;  %v3222_v46 = vld [vmem:[#allocation18_spill] sm:$0xff]  ;;  %v3224_v44 = vld [vmem:[#allocation19_spill] sm:$0xff] }
 0x2fc   :  { %v903_v40 = vsel %vm900_vm12, %v902_v43, %v898_v52  ;;  %v926_v33 = vmul.f32 %v1703_v54, %v884_v41  ;;  %vm920_vm0 = vcmp.eq.f32.partialorder %v919_v39, 8.507059e+37  ;;  %v3218_v41 = vld [vmem:[#allocation28_spill] sm:$0xff]  ;;  %v3223_v30 = vld [vmem:[#allocation14_spill] sm:$0xff]  ;;  %v3225_v43 = vld [vmem:[#allocation29_spill] sm:$0xff] }
 0x2fd   :  { %v925_v45 = vmul.f32 %v903_v40, %v2706_v26  ;;  %v913_v38 = vmul.f32 %v1701_v15, %v912_v37  ;;  %v3214_v26 = vld [vmem:[#allocation32_spill] sm:$0xff]  ;;  %v3217_v37 = vld [vmem:[#allocation13_spill] sm:$0xff]  ;;  %v3226_v34 = vld [vmem:[#allocation27_spill] sm:$0xff] }
 0x2fe   :  { %v3227_v54 = vld [vmem:[#allocation35_spill] sm:$0xff]  ;;  %v3228_v52 = vld [vmem:[#allocation24_spill] sm:$0xff] }
 0x2ff   :  { %v2806_v49 = vadd.f32 %v926_v33, %v925_v45  ;;  %v914_v53 = vadd.f32 %v1701_v15, %v913_v38  ;;  %v3215_v45 = vld [vmem:[#allocation22_spill] sm:$0xff]  ;;  %v3216_v33 = vld [vmem:[#allocation17_spill] sm:$0xff]  ;;  %v3229_v40 = vld [vmem:[#allocation31_spill] sm:$0xff] }
 0x300   :  { %v3230_v38 = vld [vmem:[#allocation21_spill] sm:$0xff]  ;;  %v3233_v39 = vld [vmem:[#allocation36_spill] sm:$0xff] }
 0x301   :  { %1704 = vtanh.f32 %v2806_v49  ;;  %v918_v51 = vsel %vm917_vm15, %v1701_v15, %v914_v53  ;;  %v3219_v15 = vld [vmem:[#allocation16_spill] sm:$0xff]  ;;  %v3231_v53 = vld [vmem:[#allocation30_spill] sm:$0xff] }
 0x302   :  { %v923_v50 = vsel %vm920_vm0, %v922_v42, %v918_v51  ;;  %v3234_v51 = vld [vmem:[#allocation34_spill] sm:$0xff]  ;;  %v3235_v42 = vld [vmem:[#allocation25_spill] sm:$0xff] }
 0x307   :  { %v1705_v36 = vpop.eup %1704 }
 0x308   :  { %v929_v58 = vmul.f32 %v1705_v36, %v923_v50  ;;  %v3236_v36 = vld [vmem:[#allocation23_spill] sm:$0xff]  ;;  %v3237_v50 = vld [vmem:[#allocation33_spill] sm:$0xff] }
 0x30a   :  { %946 = vmatmul.f32.vlgmr.msrb.gmra.mxu0 %v929_v58  ;;  %966 = vmatmul.f32.vlgmr.msra.gmra.mxu1 %v929_v58 }
 0x30b   :  { %986 = vmatmul.f32.vlgmr.msra.gmra.mxu2 %v929_v58  ;;  %1006 = vmatmul.f32.vlgmr.msra.gmra.mxu3 %v929_v58  ;;  %v3238_v58 = vld [vmem:[#allocation38_spill] sm:$0xff] }
 0x30c   :  { %1216 = vmatpush.msrb.mxu0 %v2537_v1  ;;  %1236 = vmatpush.msra.mxu1 %v2540_v59 }
 0x30d   :  { %1256 = vmatpush.msra.mxu2 %v2543_v60  ;;  %1276 = vmatpush.msra.mxu3 %v2546_v62 }
 0x30e   :  { %1217 = vmatpush.msrb.mxu0 %v2549_v3  ;;  %1237 = vmatpush.msra.mxu1 %v2552_v10 }
 0x30f   :  { %1257 = vmatpush.msra.mxu2 %v2555_v5  ;;  %1277 = vmatpush.msra.mxu3 %v2558_v22 }
 0x310   :  { %1218 = vmatpush.msrb.mxu0 %v2561_v48  ;;  %1238 = vmatpush.msra.mxu1 %v2564_v13 }
 0x311   :  { %1258 = vmatpush.msra.mxu2 %v2567_v8  ;;  %1278 = vmatpush.msra.mxu3 %v2570_v7 }
 0x312   :  { %1219 = vmatpush.msrb.mxu0 %v2573_v12  ;;  %1239 = vmatpush.msra.mxu1 %v2576_v20 }
 0x313   :  { %1259 = vmatpush.msra.mxu2 %v2579_v35  ;;  %1279 = vmatpush.msra.mxu3 %v2582_v14 }
 0x314   :  { %1220 = vmatpush.msrb.mxu0 %v2585_v18  ;;  %1240 = vmatpush.msra.mxu1 %v2588_v57 }
 0x315   :  { %1260 = vmatpush.msra.mxu2 %v2591_v0  ;;  %1280 = vmatpush.msra.mxu3 %v2594_v9 }
 0x316   :  { %1221 = vmatpush.msrb.mxu0 %v2597_v63  ;;  %1241 = vmatpush.msra.mxu1 %v2600_v21 }
 0x317   :  { %1261 = vmatpush.msra.mxu2 %v2603_v17  ;;  %1281 = vmatpush.msra.mxu3 %v2606_v23 }
 0x318   :  { %1222 = vmatpush.msrb.mxu0 %v2609_v11  ;;  %1242 = vmatpush.msra.mxu1 %v2612_v61 }
 0x319   :  { %1262 = vmatpush.msra.mxu2 %v2615_v6  ;;  %1282 = vmatpush.msra.mxu3 %v2618_v4 }
 0x31a   :  { %1223 = vmatpush.msrb.mxu0 %v2621_v2  ;;  %1243 = vmatpush.msra.mxu1 %v2624_v16 }
 0x31b   :  { %1263 = vmatpush.msra.mxu2 %v2627_v19  ;;  %1283 = vmatpush.msra.mxu3 %v2630_v24 }
 0x31c   :  { %1224 = vmatpush.msrb.mxu0 %v2633_v25  ;;  %1244 = vmatpush.msra.mxu1 %v2636_v27 }
 0x31d   :  { %1264 = vmatpush.msra.mxu2 %v2639_v28  ;;  %1284 = vmatpush.msra.mxu3 %v2642_v29 }
 0x31e   :  { %1225 = vmatpush.msrb.mxu0 %v2645_v31  ;;  %1245 = vmatpush.msra.mxu1 %v2648_v32 }
 0x31f   :  { %1265 = vmatpush.msra.mxu2 %v3214_v26  ;;  %1285 = vmatpush.msra.mxu3 %v3215_v45 }
 0x320   :  { %1226 = vmatpush.msrb.mxu0 %v3216_v33  ;;  %1246 = vmatpush.msra.mxu1 %v3217_v37 }
 0x321   :  { %1266 = vmatpush.msra.mxu2 %v3218_v41  ;;  %1286 = vmatpush.msra.mxu3 %v3219_v15 }
 0x322   :  { %1227 = vmatpush.msrb.mxu0 %v3220_v47  ;;  %1247 = vmatpush.msra.mxu1 %v3221_v55 }
 0x323   :  { %1267 = vmatpush.msra.mxu2 %v3222_v46  ;;  %1287 = vmatpush.msra.mxu3 %v3223_v30 }
 0x324   :  { %1228 = vmatpush.msrb.mxu0 %v3224_v44  ;;  %1248 = vmatpush.msra.mxu1 %v3225_v43 }
 0x325   :  { %1268 = vmatpush.msra.mxu2 %v3226_v34  ;;  %1288 = vmatpush.msra.mxu3 %v3227_v54  ;;  %v3240_v54 = vld [vmem:[#allocation50_spill] sm:$0xff] }
 0x326   :  { %1229 = vmatpush.msrb.mxu0 %v3228_v52  ;;  %1249 = vmatpush.msra.mxu1 %v3229_v40  ;;  %v3239_v52 = vld [vmem:[#allocation37_spill] sm:$0xff]  ;;  %v3241_v34 = vld [vmem:[#allocation54_spill] sm:$0xff] }
 0x327   :  { %1269 = vmatpush.msra.mxu2 %v3230_v38  ;;  %1289 = vmatpush.msra.mxu3 %v3231_v53 }
 0x328   :  { %1230 = vmatpush.msrb.mxu0 %v3232_v56  ;;  %1250 = vmatpush.msra.mxu1 %v3233_v39 }
 0x329   :  { %1270 = vmatpush.msra.mxu2 %v3234_v51  ;;  %1290 = vmatpush.msra.mxu3 %v3235_v42  ;;  %v3242_v42 = vld [vmem:[#allocation56_spill] sm:$0xff] }
 0x32a   :  { %1231 = vmatpush.msrb.mxu0 %v3236_v36  ;;  %1251 = vmatpush.msra.mxu1 %v3237_v50 }
 0x32b   :  { %1271 = vmatpush.msra.mxu2 %v3238_v58  ;;  %1291 = vmatpush.msra.mxu3 %v3239_v52 }
 0x387   :  { %v947_v40 = vpop.f32.mrf.mxu0  ;;  %v967_v38 = vpop.f32.mrf.mxu1 }
 0x388   :  { %v948_v53 = vadd.f32 %v947_v40, %v3240_v54  ;;  %v968_v56 = vadd.f32 %v967_v38, %v3241_v34  ;;  %v3243_v34 = vld [vmem:[#allocation55_spill] sm:$0xff] }
 0x38a   :  { %v1608_v43 = vmul.f32 -1.442695, %v948_v53  ;;  %v1609_v39 = vmul.f32 -1.442695, %v968_v56 }
 0x38c   :  { %1706 = vpow2.f32 %v1608_v43 }
 0x38d   :  { %1708 = vpow2.f32 %v1609_v39 }
 0x38e   :  { %v1007_v51 = vpop.f32.mrf.mxu3  ;;  %v987_v52 = vpop.f32.mrf.mxu2 }
 0x38f   :  { %v1008_v44 = vadd.f32 %v1007_v51, %v3242_v42  ;;  %v988_v38 = vadd.f32 %v987_v52, %v3243_v34 }
 0x391   :  { %v1610_v36 = vmul.f32 -1.442695, %v1008_v44 }
 0x392   :  { %v1707_v30 = vpop.eup %1706 }
 0x393   :  { %v1709_v50 = vpop.eup %1708  ;;  %v1013_v46 = vadd.f32 1.0, %v1707_v30  ;;  %1710 = vpow2.f32 %v1610_v36 }
 0x394   :  { %v1032_v58 = vadd.f32 1.0, %v1709_v50 }
 0x395   :  { %1712 = vrcp.f32 %v1013_v46  ;;  %v1025_v44 = vand.u32 2147483648, %v1013_v46  ;;  %v1023_v36 = vand.u32 2147483647, %v1013_v46  ;;  %vm1019_vm3 = vweird.f32 %v1013_v46 }
 0x396   :  { %1714 = vrcp.f32 %v1032_v58  ;;  %v1044_v42 = vand.u32 2147483648, %v1032_v58  ;;  %v1042_v47 = vand.u32 2147483647, %v1032_v58  ;;  %vm1038_vm4 = vweird.f32 %v1032_v58 }
 0x397   :  { %v1026_v52 = vor.u32 1.1754944e-38, %v1025_v44  ;;  %vm1024_vm7 = vcmp.eq.f32.partialorder %v1023_v36, 8.507059e+37 }
 0x398   :  { %vm1043_vm8 = vcmp.eq.f32.partialorder %v1042_v47, 8.507059e+37 }
 0x399   :  { %v1711_v55 = vpop.eup %1710 }
 0x39a   :  { %v1052_v54 = vadd.f32 1.0, %v1711_v55 }
 0x39b   :  { %v1713_v40 = vpop.eup %1712 }
 0x39c   :  { %v1715_v53 = vpop.eup %1714  ;;  %v1015_v43 = vmul.f32 %v1713_v40, %v1013_v46  ;;  %1716 = vrcp.f32 %v1052_v54  ;;  %vm1020_vm1 = vweird.f32 %v1713_v40  ;;  %v1064_v44 = vand.u32 2147483648, %v1052_v54 }
 0x39d   :  { %v1034_v56 = vmul.f32 %v1715_v53, %v1032_v58  ;;  %1718 = vtanh.f32 %v988_v38  ;;  %vm1039_vm2 = vweird.f32 %v1715_v53  ;;  %vm1021_vm5 = vmor %vm1019_vm3, %vm1020_vm1  ;;  %vm1058_vm10 = vweird.f32 %v1052_v54 }
 0x39e   :  { %v1016_v39 = vsub.f32 1.0, %v1015_v43  ;;  %vm1040_vm6 = vmor %vm1038_vm4, %vm1039_vm2  ;;  %v1045_v43 = vor.u32 1.1754944e-38, %v1044_v42  ;;  %v1065_v36 = vor.u32 1.1754944e-38, %v1064_v44 }
 0x39f   :  { %v1035_v51 = vsub.f32 1.0, %v1034_v56 }
 0x3a0   :  { %v1017_v30 = vmul.f32 %v1713_v40, %v1016_v39 }
 0x3a1   :  { %v1036_v50 = vmul.f32 %v1715_v53, %v1035_v51 }
 0x3a2   :  { %v1717_v15 = vpop.eup %1716  ;;  %v1018_v55 = vadd.f32 %v1713_v40, %v1017_v30 }
 0x3a3   :  { %v1037_v34 = vadd.f32 %v1715_v53, %v1036_v50  ;;  %v1054_v41 = vmul.f32 %v1717_v15, %v1052_v54  ;;  %v1719_v38 = vpop.eup %1718  ;;  %vm1059_vm9 = vweird.f32 %v1717_v15 }
 0x3a4   :  { %v1022_v56 = vsel %vm1021_vm5, %v1713_v40, %v1018_v55  ;;  %v1062_v40 = vand.u32 2147483647, %v1052_v54  ;;  %vm1060_vm11 = vmor %vm1058_vm10, %vm1059_vm9  ;;  %v3273_v55 = vld [vmem:[#allocation58_spill] sm:$0xff] }
 0x3a5   :  { %v1027_v37 = vsel %vm1024_vm7, %v1026_v52, %v1022_v56  ;;  %v1041_v39 = vsel %vm1040_vm6, %v1715_v53, %v1037_v34  ;;  %v1055_v33 = vsub.f32 1.0, %v1054_v41 }
 0x3a6   :  { %v1046_v51 = vsel %vm1043_vm8, %v1045_v43, %v1041_v39  ;;  %v1069_v45 = vmul.f32 %v1719_v38, %v1027_v37  ;;  %vm1063_vm12 = vcmp.eq.f32.partialorder %v1062_v40, 8.507059e+37 }
 0x3a7   :  { %v1068_v26 = vmul.f32 %v1046_v51, %v2806_v49  ;;  %v1056_v30 = vmul.f32 %v1717_v15, %v1055_v33 }
 0x3a9   :  { %v2878_v46 = vadd.f32 %v1069_v45, %v1068_v26  ;;  %v1057_v58 = vadd.f32 %v1717_v15, %v1056_v30 }
 0x3ab   :  { %1720 = vtanh.f32 %v2878_v46  ;;  %v1061_v42 = vsel %vm1060_vm11, %v1717_v15, %v1057_v58 }
 0x3ac   :  { %v1066_v41 = vsel %vm1063_vm12, %v1065_v36, %v1061_v42 }
 0x3b1   :  { %v1721_v47 = vpop.eup %1720 }
 0x3b2   :  { %v1072_v53 = vmul.f32 %v1721_v47, %v1066_v41 }
 0x3b4   :  { %1089 = vmatmul.f32.vlgmr.msra.gmra.mxu0 %v1072_v53  ;;  %1109 = vmatmul.f32.vlgmr.msrb.gmra.mxu1 %v1072_v53 }
 0x3b5   :  { %1129 = vmatmul.f32.vlgmr.msrb.gmra.mxu2 %v1072_v53  ;;  %1149 = vmatmul.f32.vlgmr.msrb.gmra.mxu3 %v1072_v53 }
 0x3b6   :  { %1359 = vmatpush.msra.mxu0 %v2537_v1  ;;  %1379 = vmatpush.msrb.mxu1 %v2540_v59  ;;  %v3244_v1 = vld [vmem:[#allocation32_spill] sm:$0xff]  ;;  %v3245_v59 = vld [vmem:[#allocation22_spill] sm:$0xff] }
 0x3b7   :  { %1399 = vmatpush.msrb.mxu2 %v2543_v60  ;;  %1419 = vmatpush.msrb.mxu3 %v2546_v62  ;;  %v3246_v60 = vld [vmem:[#allocation17_spill] sm:$0xff] }
 0x3b8   :  { %1360 = vmatpush.msra.mxu0 %v2549_v3  ;;  %1380 = vmatpush.msrb.mxu1 %v2552_v10  ;;  %v3247_v62 = vld [vmem:[#allocation13_spill] sm:$0xff]  ;;  %v3248_v3 = vld [vmem:[#allocation28_spill] sm:$0xff] }
 0x3b9   :  { %1400 = vmatpush.msrb.mxu2 %v2555_v5  ;;  %1420 = vmatpush.msrb.mxu3 %v2558_v22  ;;  %v3249_v10 = vld [vmem:[#allocation16_spill] sm:$0xff]  ;;  %v3250_v5 = vld [vmem:[#allocation26_spill] sm:$0xff] }
 0x3ba   :  { %1361 = vmatpush.msra.mxu0 %v2561_v48  ;;  %1381 = vmatpush.msrb.mxu1 %v2564_v13  ;;  %v3251_v22 = vld [vmem:[#allocation20_spill] sm:$0xff]  ;;  %v3252_v48 = vld [vmem:[#allocation18_spill] sm:$0xff] }
 0x3bb   :  { %1401 = vmatpush.msrb.mxu2 %v2567_v8  ;;  %1421 = vmatpush.msrb.mxu3 %v2570_v7  ;;  %v3253_v13 = vld [vmem:[#allocation14_spill] sm:$0xff]  ;;  %v3254_v8 = vld [vmem:[#allocation19_spill] sm:$0xff]  ;;  %v3255_v7 = vld [vmem:[#allocation29_spill] sm:$0xff] }
 0x3bc   :  { %1362 = vmatpush.msra.mxu0 %v2573_v12  ;;  %1382 = vmatpush.msrb.mxu1 %v2576_v20  ;;  %v3256_v12 = vld [vmem:[#allocation27_spill] sm:$0xff] }
 0x3bd   :  { %1402 = vmatpush.msrb.mxu2 %v2579_v35  ;;  %1422 = vmatpush.msrb.mxu3 %v2582_v14  ;;  %v3257_v20 = vld [vmem:[#allocation35_spill] sm:$0xff]  ;;  %v3258_v35 = vld [vmem:[#allocation24_spill] sm:$0xff] }
 0x3be   :  { %1363 = vmatpush.msra.mxu0 %v2585_v18  ;;  %1383 = vmatpush.msrb.mxu1 %v2588_v57  ;;  %v3259_v14 = vld [vmem:[#allocation31_spill] sm:$0xff]  ;;  %v3260_v18 = vld [vmem:[#allocation21_spill] sm:$0xff]  ;;  %v3261_v57 = vld [vmem:[#allocation30_spill] sm:$0xff] }
 0x3bf   :  { %1403 = vmatpush.msrb.mxu2 %v2591_v0  ;;  %1423 = vmatpush.msrb.mxu3 %v2594_v9  ;;  %v3262_v0 = vld [vmem:[#allocation15_spill] sm:$0xff]  ;;  %v3263_v9 = vld [vmem:[#allocation36_spill] sm:$0xff] }
 0x3c0   :  { %1364 = vmatpush.msra.mxu0 %v2597_v63  ;;  %1384 = vmatpush.msrb.mxu1 %v2600_v21  ;;  %v3264_v63 = vld [vmem:[#allocation34_spill] sm:$0xff]  ;;  %v3265_v21 = vld [vmem:[#allocation25_spill] sm:$0xff] }
 0x3c1   :  { %1404 = vmatpush.msrb.mxu2 %v2603_v17  ;;  %1424 = vmatpush.msrb.mxu3 %v2606_v23  ;;  %v3266_v17 = vld [vmem:[#allocation23_spill] sm:$0xff]  ;;  %v3267_v23 = vld [vmem:[#allocation33_spill] sm:$0xff] }
 0x3c2   :  { %1365 = vmatpush.msra.mxu0 %v2609_v11  ;;  %1385 = vmatpush.msrb.mxu1 %v2612_v61  ;;  %v3268_v11 = vld [vmem:[#allocation38_spill] sm:$0xff]  ;;  %v3269_v61 = vld [vmem:[#allocation37_spill] sm:$0xff] }
 0x3c3   :  { %1405 = vmatpush.msrb.mxu2 %v2615_v6  ;;  %1425 = vmatpush.msrb.mxu3 %v2618_v4 }
 0x3c4   :  { %1366 = vmatpush.msra.mxu0 %v2621_v2  ;;  %1386 = vmatpush.msrb.mxu1 %v2624_v16  ;;  %v3270_v2 = vld [vmem:[#allocation12_spill] sm:$0xff] }
 0x3c5   :  { %1406 = vmatpush.msrb.mxu2 %v2627_v19  ;;  %1426 = vmatpush.msrb.mxu3 %v2630_v24  ;;  %v3271_v19 = vld [vmem:[#allocation57_spill] sm:$0xff] }
 0x3c6   :  { %1367 = vmatpush.msra.mxu0 %v2633_v25  ;;  %1387 = vmatpush.msrb.mxu1 %v2636_v27 }
 0x3c7   :  { %1407 = vmatpush.msrb.mxu2 %v2639_v28  ;;  %1427 = vmatpush.msrb.mxu3 %v2642_v29  ;;  %v3272_v29 = vld [vmem:[#allocation59_spill] sm:$0xff] }
 0x3c8   :  { %1368 = vmatpush.msra.mxu0 %v2645_v31  ;;  %1388 = vmatpush.msrb.mxu1 %v2648_v32 }
 0x3c9   :  { %1408 = vmatpush.msrb.mxu2 %v3244_v1  ;;  %1428 = vmatpush.msrb.mxu3 %v3245_v59 }
 0x3ca   :  { %1369 = vmatpush.msra.mxu0 %v3246_v60  ;;  %1389 = vmatpush.msrb.mxu1 %v3247_v62 }
 0x3cb   :  { %1409 = vmatpush.msrb.mxu2 %v3248_v3  ;;  %1429 = vmatpush.msrb.mxu3 %v3249_v10 }
 0x3cc   :  { %1370 = vmatpush.msra.mxu0 %v3250_v5  ;;  %1390 = vmatpush.msrb.mxu1 %v3251_v22 }
 0x3cd   :  { %1410 = vmatpush.msrb.mxu2 %v3252_v48  ;;  %1430 = vmatpush.msrb.mxu3 %v3253_v13 }
 0x3ce   :  { %1371 = vmatpush.msra.mxu0 %v3254_v8  ;;  %1391 = vmatpush.msrb.mxu1 %v3255_v7 }
 0x3cf   :  { %1411 = vmatpush.msrb.mxu2 %v3256_v12  ;;  %1431 = vmatpush.msrb.mxu3 %v3257_v20 }
 0x3d0   :  { %1372 = vmatpush.msra.mxu0 %v3258_v35  ;;  %1392 = vmatpush.msrb.mxu1 %v3259_v14 }
 0x3d1   :  { %1412 = vmatpush.msrb.mxu2 %v3260_v18  ;;  %1432 = vmatpush.msrb.mxu3 %v3261_v57 }
 0x3d2   :  { %1373 = vmatpush.msra.mxu0 %v3262_v0  ;;  %1393 = vmatpush.msrb.mxu1 %v3263_v9 }
 0x3d3   :  { %1413 = vmatpush.msrb.mxu2 %v3264_v63  ;;  %1433 = vmatpush.msrb.mxu3 %v3265_v21  ;;  %v3274_v21 = vld [vmem:[#allocation39_spill] sm:$0xff] }
 0x3d4   :  { %1374 = vmatpush.msra.mxu0 %v3266_v17  ;;  %1394 = vmatpush.msrb.mxu1 %v3267_v23  ;;  %v3275_v23 = vld [vmem:[#allocation60_spill] sm:$0xff] }
 0x3d5   :  { %1414 = vmatpush.msrb.mxu2 %v3268_v11  ;;  %1434 = vmatpush.msrb.mxu3 %v3269_v61 }
 0x431   :  { %v1090_v6 = vpop.f32.mrf.mxu0  ;;  %v1110_v4 = vpop.f32.mrf.mxu1 }
 0x432   :  { %v1091_v16 = vadd.f32 %v1090_v6, %v3270_v2  ;;  %v1111_v24 = vadd.f32 %v1110_v4, %v3271_v19  ;;  %v3276_v2 = vld [vmem:[#allocation62_spill] sm:$0xff] }
 0x434   :  { %v1611_v25 = vmul.f32 -1.442695, %v1091_v16  ;;  %v1612_v27 = vmul.f32 -1.442695, %v1111_v24 }
 0x436   :  { %1722 = vpow2.f32 %v1611_v25 }
 0x437   :  { %1724 = vpow2.f32 %v1612_v27 }
 0x438   :  { %v1150_v28 = vpop.f32.mrf.mxu3  ;;  %v1130_v37 = vpop.f32.mrf.mxu2 }
 0x439   :  { %v1151_v31 = vadd.f32 %v1150_v28, %v3272_v29  ;;  %v1131_v52 = vadd.f32 %v1130_v37, %v3273_v55 }
 0x43b   :  { %v1613_v32 = vmul.f32 -1.442695, %v1151_v31 }
 0x43c   :  { %v1723_v49 = vpop.eup %1722 }
 0x43d   :  { %v1725_v26 = vpop.eup %1724  ;;  %v1156_v45 = vadd.f32 1.0, %v1723_v49  ;;  %1726 = vpow2.f32 %v1613_v32 }
 0x43e   :  { %v1175_v33 = vadd.f32 1.0, %v1725_v26  ;;  %v3277_v26 = vld [vmem:[#allocation61_spill] sm:$0xff] }
 0x43f   :  { %1728 = vrcp.f32 %v1156_v45  ;;  %v1168_v51 = vand.u32 2147483648, %v1156_v45  ;;  %v1166_v44 = vand.u32 2147483647, %v1156_v45  ;;  %vm1162_vm15 = vweird.f32 %v1156_v45 }
 0x440   :  { %1730 = vrcp.f32 %v1175_v33  ;;  %v1187_v30 = vand.u32 2147483648, %v1175_v33  ;;  %v1185_v42 = vand.u32 2147483647, %v1175_v33  ;;  %vm1181_vm0 = vweird.f32 %v1175_v33 }
 0x441   :  { %v1169_v41 = vor.u32 1.1754944e-38, %v1168_v51  ;;  %vm1167_vm3 = vcmp.eq.f32.partialorder %v1166_v44, 8.507059e+37 }
 0x442   :  { %v1188_v59 = vor.u32 1.1754944e-38, %v1187_v30  ;;  %vm1186_vm4 = vcmp.eq.f32.partialorder %v1185_v42, 8.507059e+37 }
 0x443   :  { %v1727_v15 = vpop.eup %1726 }
 0x444   :  { %v1195_v54 = vadd.f32 1.0, %v1727_v15 }
 0x445   :  { %v1729_v50 = vpop.eup %1728 }
 0x446   :  { %v1731_v34 = vpop.eup %1730  ;;  %v1158_v43 = vmul.f32 %v1729_v50, %v1156_v45  ;;  %1732 = vrcp.f32 %v1195_v54  ;;  %vm1163_vm13 = vweird.f32 %v1729_v50  ;;  %v1207_v20 = vand.u32 2147483648, %v1195_v54 }
 0x447   :  { %v1177_v56 = vmul.f32 %v1731_v34, %v1175_v33  ;;  %1734 = vtanh.f32 %v1131_v52  ;;  %vm1182_vm14 = vweird.f32 %v1731_v34  ;;  %vm1164_vm1 = vmor %vm1162_vm15, %vm1163_vm13  ;;  %vm1201_vm6 = vweird.f32 %v1195_v54 }
 0x448   :  { %v1159_v38 = vsub.f32 1.0, %v1158_v43  ;;  %vm1183_vm2 = vmor %vm1181_vm0, %vm1182_vm14  ;;  %v1205_v35 = vand.u32 2147483647, %v1195_v54  ;;  %v1208_v18 = vor.u32 1.1754944e-38, %v1207_v20 }
 0x449   :  { %v1178_v39 = vsub.f32 1.0, %v1177_v56 }
 0x44a   :  { %v1160_v58 = vmul.f32 %v1729_v50, %v1159_v38  ;;  %vm1206_vm8 = vcmp.eq.f32.partialorder %v1205_v35, 8.507059e+37  ;;  %v1516_v35 = vld [vmem:[#allocation7 + $0x70] sm:$0xff] }
 0x44b   :  { %v1179_v40 = vmul.f32 %v1731_v34, %v1178_v39 }
 0x44c   :  { %v1733_v36 = vpop.eup %1732  ;;  %v1161_v47 = vadd.f32 %v1729_v50, %v1160_v58 }
 0x44d   :  { %v1180_v53 = vadd.f32 %v1731_v34, %v1179_v40  ;;  %v1197_v1 = vmul.f32 %v1733_v36, %v1195_v54  ;;  %v1735_v62 = vpop.eup %1734  ;;  %vm1202_vm5 = vweird.f32 %v1733_v36 }
 0x44e   :  { %v1165_v60 = vsel %vm1164_vm1, %v1729_v50, %v1161_v47  ;;  %vm1203_vm7 = vmor %vm1201_vm6, %vm1202_vm5 }
 0x44f   :  { %v1170_v3 = vsel %vm1167_vm3, %v1169_v41, %v1165_v60  ;;  %v1184_v10 = vsel %vm1183_vm2, %v1731_v34, %v1180_v53  ;;  %v1198_v5 = vsub.f32 1.0, %v1197_v1 }
 0x450   :  { %v1189_v22 = vsel %vm1186_vm4, %v1188_v59, %v1184_v10  ;;  %v1212_v48 = vmul.f32 %v1735_v62, %v1170_v3 }
 0x451   :  { %v1211_v13 = vmul.f32 %v1189_v22, %v2878_v46  ;;  %v1199_v8 = vmul.f32 %v1733_v36, %v1198_v5 }
 0x453   :  { %v2950_v7 = vadd.f32 %v1212_v48, %v1211_v13  ;;  %v1200_v12 = vadd.f32 %v1733_v36, %v1199_v8 }
 0x455   :  { %1736 = vtanh.f32 %v2950_v7  ;;  %v1204_v14 = vsel %vm1203_vm7, %v1733_v36, %v1200_v12 }
 0x456   :  { %v1209_v0 = vsel %vm1206_vm8, %v1208_v18, %v1204_v14  ;;  %v1515_v14 = vld [vmem:[#allocation7 + $0x68] sm:$0xff]  ;;  %v1514_v18 = vld [vmem:[#allocation7 + $0x60] sm:$0xff] }
 0x45b   :  { %v1737_v57 = vpop.eup %1736 }
 0x45c   :  { %v1215_v9 = vmul.f32 %v1737_v57, %v1209_v0  ;;  %v1513_v57 = vld [vmem:[#allocation7 + $0x58] sm:$0xff]  ;;  %v1512_v0 = vld [vmem:[#allocation7 + $0x50] sm:$0xff] }
 0x45e   :  { %1232 = vmatmul.f32.vlgmr.msrb.gmra.mxu0 %v1215_v9  ;;  %1252 = vmatmul.f32.vlgmr.msra.gmra.mxu1 %v1215_v9 }
 0x45f   :  { %1272 = vmatmul.f32.vlgmr.msra.gmra.mxu2 %v1215_v9  ;;  %1292 = vmatmul.f32.vlgmr.msra.gmra.mxu3 %v1215_v9  ;;  %v1511_v9 = vld [vmem:[#allocation7 + $0x48] sm:$0xff] }
 0x4db   :  { %v1233_v46 = vpop.f32.mrf.mxu0  ;;  %v1253_v63 = vpop.f32.mrf.mxu1 }
 0x4dc   :  { %v1234_v17 = vadd.f32 %v1233_v46, %v3274_v21  ;;  %v1254_v11 = vadd.f32 %v1253_v63, %v3275_v23  ;;  %v1510_v46 = vld [vmem:[#allocation7 + $0x40] sm:$0xff]  ;;  %v1509_v63 = vld [vmem:[#allocation7 + $0x38] sm:$0xff]  ;;  %v1508_v21 = vld [vmem:[#allocation7 + $0x30] sm:$0xff] }
 0x4de   :  { %v1614_v61 = vmul.f32 -1.442695, %v1234_v17  ;;  %v1615_v6 = vmul.f32 -1.442695, %v1254_v11  ;;  %v3278_v11 = vld [vmem:[#allocation40_spill] sm:$0xff] }
 0x4e0   :  { %1738 = vpow2.f32 %v1614_v61 }
 0x4e1   :  { %1740 = vpow2.f32 %v1615_v6  ;;  %v3279_v6 = vld [vmem:[#allocation63_spill] sm:$0xff] }
 0x4e2   :  { %v1293_v4 = vpop.f32.mrf.mxu3  ;;  %v1273_v29 = vpop.f32.mrf.mxu2 }
 0x4e3   :  { %v1294_v16 = vadd.f32 %v1293_v4, %v3276_v2  ;;  %v1274_v45 = vadd.f32 %v1273_v29, %v3277_v26  ;;  %v1507_v2 = vld [vmem:[#allocation7 + $0x28] sm:$0xff] }
 0x4e4   :  { %v1503_v29 = vld [vmem:[#allocation7 + $0x8] sm:$0xff] }
 0x4e5   :  { %v1616_v19 = vmul.f32 -1.442695, %v1294_v16 }
 0x4e6   :  { %v1739_v24 = vpop.eup %1738 }
 0x4e7   :  { %v1741_v25 = vpop.eup %1740  ;;  %v1299_v27 = vadd.f32 1.0, %v1739_v24  ;;  %1742 = vpow2.f32 %v1616_v19  ;;  %v1506_v24 = vld [vmem:[#allocation7 + $0x20] sm:$0xff] }
 0x4e8   :  { %v1318_v28 = vadd.f32 1.0, %v1741_v25  ;;  %v1505_v25 = vld [vmem:[#allocation7 + $0x18] sm:$0xff] }
 0x4e9   :  { %1744 = vrcp.f32 %v1299_v27  ;;  %v1311_v55 = vand.u32 2147483648, %v1299_v27  ;;  %v1309_v43 = vand.u32 2147483647, %v1299_v27  ;;  %vm1305_vm11 = vweird.f32 %v1299_v27 }
 0x4ea   :  { %1746 = vrcp.f32 %v1318_v28  ;;  %v1330_v52 = vand.u32 2147483648, %v1318_v28  ;;  %v1328_v38 = vand.u32 2147483647, %v1318_v28  ;;  %vm1324_vm12 = vweird.f32 %v1318_v28 }
 0x4eb   :  { %v1312_v30 = vor.u32 1.1754944e-38, %v1311_v55  ;;  %vm1310_vm15 = vcmp.eq.f32.partialorder %v1309_v43, 8.507059e+37 }
 0x4ec   :  { %v1331_v40 = vor.u32 1.1754944e-38, %v1330_v52  ;;  %vm1329_vm0 = vcmp.eq.f32.partialorder %v1328_v38, 8.507059e+37 }
 0x4ed   :  { %v1743_v31 = vpop.eup %1742 }
 0x4ee   :  { %v1338_v32 = vadd.f32 1.0, %v1743_v31  ;;  %v3280_v31 = vld [vmem:[#allocation65_spill] sm:$0xff] }
 0x4ef   :  { %v1745_v49 = vpop.eup %1744 }
 0x4f0   :  { %v1747_v33 = vpop.eup %1746  ;;  %v1301_v37 = vmul.f32 %v1745_v49, %v1299_v27  ;;  %1748 = vrcp.f32 %v1338_v32  ;;  %vm1306_vm9 = vweird.f32 %v1745_v49  ;;  %v1350_v5 = vand.u32 2147483648, %v1338_v32  ;;  %v1504_v27 = vld [vmem:[#allocation7 + $0x10] sm:$0xff] }
 0x4f1   :  { %v1320_v15 = vmul.f32 %v1747_v33, %v1318_v28  ;;  %1750 = vtanh.f32 %v1274_v45  ;;  %vm1325_vm10 = vweird.f32 %v1747_v33  ;;  %vm1307_vm13 = vmor %vm1305_vm11, %vm1306_vm9  ;;  %vm1344_vm2 = vweird.f32 %v1338_v32 }
 0x4f2   :  { %v1302_v54 = vsub.f32 1.0, %v1301_v37  ;;  %vm1326_vm14 = vmor %vm1324_vm12, %vm1325_vm10  ;;  %v1348_v22 = vand.u32 2147483647, %v1338_v32  ;;  %v1351_v13 = vor.u32 1.1754944e-38, %v1350_v5 }
 0x4f3   :  { %v1321_v50 = vsub.f32 1.0, %v1320_v15 }
 0x4f4   :  { %v1303_v34 = vmul.f32 %v1745_v49, %v1302_v54  ;;  %vm1349_vm4 = vcmp.eq.f32.partialorder %v1348_v22, 8.507059e+37 }
 0x4f5   :  { %v1322_v56 = vmul.f32 %v1747_v33, %v1321_v50 }
 0x4f6   :  { %v1749_v39 = vpop.eup %1748  ;;  %v1304_v51 = vadd.f32 %v1745_v49, %v1303_v34  ;;  %v3281_v34 = vld [vmem:[#allocation64_spill] sm:$0xff] }
 0x4f7   :  { %v1323_v58 = vadd.f32 %v1747_v33, %v1322_v56  ;;  %v1340_v44 = vmul.f32 %v1749_v39, %v1338_v32  ;;  %v1751_v36 = vpop.eup %1750  ;;  %vm1345_vm1 = vweird.f32 %v1749_v39 }
 0x4f8   :  { %v1308_v42 = vsel %vm1307_vm13, %v1745_v49, %v1304_v51  ;;  %vm1346_vm3 = vmor %vm1344_vm2, %vm1345_vm1  ;;  %v1502_v49 = vld [vmem:[#allocation7] sm:$0xff] }
 0x4f9   :  { %v1313_v47 = vsel %vm1310_vm15, %v1312_v30, %v1308_v42  ;;  %v1327_v41 = vsel %vm1326_vm14, %v1747_v33, %v1323_v58  ;;  %v1341_v53 = vsub.f32 1.0, %v1340_v44 }
 0x4fa   :  { %v1332_v1 = vsel %vm1329_vm0, %v1331_v40, %v1327_v41  ;;  %v1355_v59 = vmul.f32 %v1751_v36, %v1313_v47 }
 0x4fb   :  { %v1354_v60 = vmul.f32 %v1332_v1, %v2950_v7  ;;  %v1342_v62 = vmul.f32 %v1749_v39, %v1341_v53  ;;  %v1517_v7 = vld [vmem:[#allocation7 + $0x78] sm:$0xff] }
 0x4fc   :  { %1522 = vmatpush.msrb.mxu0 %v1517_v7 }
 0x4fd   :  { %v2958_v3 = vadd.f32 %v1355_v59, %v1354_v60  ;;  %v1343_v10 = vadd.f32 %v1749_v39, %v1342_v62 }
 0x4fe   :  { %1523 = vmatpush.msrb.mxu0 %v1516_v35 }
 0x4ff   :  { %1752 = vtanh.f32 %v2958_v3  ;;  %v1347_v48 = vsel %vm1346_vm3, %v1749_v39, %v1343_v10 }
 0x500   :  { %v1352_v12 = vsel %vm1349_vm4, %v1351_v13, %v1347_v48  ;;  %1524 = vmatpush.msrb.mxu0 %v1515_v14 }
 0x502   :  { %1525 = vmatpush.msrb.mxu0 %v1514_v18 }
 0x504   :  { %1526 = vmatpush.msrb.mxu0 %v1513_v57 }
 0x505   :  { %v1753_v8 = vpop.eup %1752 }
 0x506   :  { %v1358_v20 = vmul.f32 %v1753_v8, %v1352_v12  ;;  %1527 = vmatpush.msrb.mxu0 %v1512_v0 }
 0x508   :  { %1375 = vmatmul.f32.vlgmr.msra.gmra.mxu0 %v1358_v20  ;;  %1395 = vmatmul.f32.vlgmr.msrb.gmra.mxu1 %v1358_v20 }
 0x509   :  { %1415 = vmatmul.f32.vlgmr.msrb.gmra.mxu2 %v1358_v20  ;;  %1435 = vmatmul.f32.vlgmr.msrb.gmra.mxu3 %v1358_v20 }
 0x50a   :  { %1528 = vmatpush.msrb.mxu0 %v1511_v9 }
 0x50c   :  { %1529 = vmatpush.msrb.mxu0 %v1510_v46 }
 0x50e   :  { %1530 = vmatpush.msrb.mxu0 %v1509_v63 }
 0x510   :  { %1531 = vmatpush.msrb.mxu0 %v1508_v21 }
 0x512   :  { %1532 = vmatpush.msrb.mxu0 %v1507_v2 }
 0x514   :  { %1533 = vmatpush.msrb.mxu0 %v1506_v24 }
 0x516   :  { %1534 = vmatpush.msrb.mxu0 %v1505_v25 }
 0x518   :  { %1535 = vmatpush.msrb.mxu0 %v1504_v27 }
 0x51a   :  { %1536 = vmatpush.msrb.mxu0 %v1503_v29 }
 0x51c   :  { %1537 = vmatpush.msrb.mxu0 %v1502_v49 }
 0x585   :  { %v1376_v17 = vpop.f32.mrf.mxu0  ;;  %v1396_v23 = vpop.f32.mrf.mxu1 }
 0x586   :  { %v1377_v61 = vadd.f32 %v1376_v17, %v3278_v11  ;;  %v1397_v4 = vadd.f32 %v1396_v23, %v3279_v6 }
 0x588   :  { %v1617_v16 = vmul.f32 -1.442695, %v1377_v61  ;;  %v1618_v19 = vmul.f32 -1.442695, %v1397_v4 }
 0x58a   :  { %1754 = vpow2.f32 %v1617_v16 }
 0x58b   :  { %1756 = vpow2.f32 %v1618_v19 }
 0x58c   :  { %v1436_v28 = vpop.f32.mrf.mxu3  ;;  %v1416_v54 = vpop.f32.mrf.mxu2 }
 0x58d   :  { %v1437_v32 = vadd.f32 %v1436_v28, %v3280_v31  ;;  %v1417_v43 = vadd.f32 %v1416_v54, %v3281_v34 }
 0x58f   :  { %v1619_v26 = vmul.f32 -1.442695, %v1437_v32 }
 0x590   :  { %v1755_v45 = vpop.eup %1754 }
 0x591   :  { %v1757_v33 = vpop.eup %1756  ;;  %v1442_v37 = vadd.f32 1.0, %v1755_v45  ;;  %1758 = vpow2.f32 %v1619_v26 }
 0x592   :  { %v1461_v15 = vadd.f32 1.0, %v1757_v33 }
 0x593   :  { %1760 = vrcp.f32 %v1442_v37  ;;  %v1454_v58 = vand.u32 2147483648, %v1442_v37  ;;  %v1452_v42 = vand.u32 2147483647, %v1442_v37  ;;  %vm1448_vm7 = vweird.f32 %v1442_v37 }
 0x594   :  { %1762 = vrcp.f32 %v1461_v15  ;;  %v1473_v44 = vand.u32 2147483648, %v1461_v15  ;;  %v1471_v47 = vand.u32 2147483647, %v1461_v15  ;;  %vm1467_vm8 = vweird.f32 %v1461_v15 }
 0x595   :  { %v1455_v1 = vor.u32 1.1754944e-38, %v1454_v58  ;;  %vm1453_vm11 = vcmp.eq.f32.partialorder %v1452_v42, 8.507059e+37 }
 0x596   :  { %v1474_v62 = vor.u32 1.1754944e-38, %v1473_v44  ;;  %vm1472_vm12 = vcmp.eq.f32.partialorder %v1471_v47, 8.507059e+37 }
 0x597   :  { %v1759_v50 = vpop.eup %1758 }
 0x598   :  { %v1481_v55 = vadd.f32 1.0, %v1759_v50 }
 0x599   :  { %v1761_v52 = vpop.eup %1760 }
 0x59a   :  { %v1763_v56 = vpop.eup %1762  ;;  %v1444_v38 = vmul.f32 %v1761_v52, %v1442_v37  ;;  %1764 = vrcp.f32 %v1481_v55  ;;  %vm1449_vm5 = vweird.f32 %v1761_v52  ;;  %v1493_v18 = vand.u32 2147483648, %v1481_v55 }
 0x59b   :  { %v1463_v39 = vmul.f32 %v1763_v56, %v1461_v15  ;;  %1766 = vtanh.f32 %v1417_v43  ;;  %vm1468_vm6 = vweird.f32 %v1763_v56  ;;  %vm1450_vm9 = vmor %vm1448_vm7, %vm1449_vm5  ;;  %vm1487_vm14 = vweird.f32 %v1481_v55 }
 0x59c   :  { %v1445_v51 = vsub.f32 1.0, %v1444_v38  ;;  %vm1469_vm10 = vmor %vm1467_vm8, %vm1468_vm6  ;;  %v1491_v57 = vand.u32 2147483647, %v1481_v55  ;;  %v1494_v9 = vor.u32 1.1754944e-38, %v1493_v18 }
 0x59d   :  { %v1464_v30 = vsub.f32 1.0, %v1463_v39 }
 0x59e   :  { %v1446_v40 = vmul.f32 %v1761_v52, %v1445_v51  ;;  %vm1492_vm0 = vcmp.eq.f32.partialorder %v1491_v57, 8.507059e+37 }
 0x59f   :  { %v1465_v36 = vmul.f32 %v1763_v56, %v1464_v30 }
 0x5a0   :  { %v1765_v41 = vpop.eup %1764  ;;  %v1447_v53 = vadd.f32 %v1761_v52, %v1446_v40 }
 0x5a1   :  { %v1466_v59 = vadd.f32 %v1763_v56, %v1465_v36  ;;  %v1483_v60 = vmul.f32 %v1765_v41, %v1481_v55  ;;  %v1767_v5 = vpop.eup %1766  ;;  %vm1488_vm13 = vweird.f32 %v1765_v41 }
 0x5a2   :  { %v1451_v10 = vsel %vm1450_vm9, %v1761_v52, %v1447_v53  ;;  %vm1489_vm15 = vmor %vm1487_vm14, %vm1488_vm13 }
 0x5a3   :  { %v1456_v22 = vsel %vm1453_vm11, %v1455_v1, %v1451_v10  ;;  %v1470_v48 = vsel %vm1469_vm10, %v1763_v56, %v1466_v59  ;;  %v1484_v13 = vsub.f32 1.0, %v1483_v60 }
 0x5a4   :  { %v1475_v8 = vsel %vm1472_vm12, %v1474_v62, %v1470_v48  ;;  %v1498_v12 = vmul.f32 %v1767_v5, %v1456_v22 }
 0x5a5   :  { %v1497_v20 = vmul.f32 %v1475_v8, %v2958_v3  ;;  %v1485_v7 = vmul.f32 %v1765_v41, %v1484_v13  ;;  %v1641_v3 = vld [vmem:[%s2977_s5] ss:$0 sm:$0xff] }
 0x5a7   :  { %v1499_v35 = vadd.f32 %v1498_v12, %v1497_v20  ;;  %v1486_v14 = vadd.f32 %v1765_v41, %v1485_v7 }
 0x5a9   :  { %1768 = vtanh.f32 %v1499_v35  ;;  %v1490_v0 = vsel %vm1489_vm15, %v1765_v41, %v1486_v14 }
 0x5aa   :  { %v1495_v63 = vsel %vm1492_vm0, %v1494_v9, %v1490_v0 }
 0x5af   :  { %v1769_v46 = vpop.eup %1768 }
 0x5b0   :  { %v1501_v21 = vmul.f32 %v1769_v46, %v1495_v63 }
 0x5b2   :  { %1538 = vmatmul.f32.vlgmr.msrb.gmra.mxu0 %v1501_v21 }
 0x62f   :  { %v1539_v17 = vpop.f32.mrf.mxu0 }
 0x630   :  { %v1540_v23 = vadd.f32 %v1641_v3, %v1539_v17 }
 0x632   :  { %vm1542_vm1 = vcmp.ge.f32.partialorder %v1540_v23, 0.0  ;;  %v1543_v11 = vmul.f32 0.01, %v1540_v23 }
 0x634   :  { %v1544_v61 = vsel %vm1542_vm1, %v1540_v23, %v1543_v11 }
 0x635   :  { %1545 = vst [vmem:[#allocation8] sm:$0xff] %v1544_v61 }
 0x636   :  { %1556 = dma.vmem_to_hbm [thread:$0]  %s1552_s8, 128, %s1554_s11, [#allocation4]  }
 0x637   :  { %1934 = dma.done.wait [#allocation4], 128  }
 0x638   :  { %1935 = vsyncadd [#allocation4], 4294967168 }
 0x639   :  { %1561 = vsyncpa [#allocation3], 1 }
 0x63a   :  { %1562 = vsyncpa [#allocation6], 1 }
 0x63b   :  { %1563 = vsyncpa [#allocation4], 1 }

</bundles_post_ra>
